<compile_context>
chip_gen: v7x
topology: tpu7x:2x2x1
jax: 0.10.0
libtpu: 0.0.40
codegen_flags: <defaults>
</compile_context>

<pallas_src>
import jax
import jax.numpy as jnp
import numpy as np
from jax.experimental import pallas as pl
from jax.experimental.pallas import tpu as pltpu

# ----------------------------- hyper-parameters -----------------------------
B = 2
IN_CN = 4
OUT_CN = 32                      # >= 32 -> GroupNorm + SiLU branch
KSIZE = 3
STRIDE = 2
GN = 8
H_IN = W_IN = 16
H_OUT = (H_IN - 1) * STRIDE + KSIZE      # 33
W_OUT = (W_IN - 1) * STRIDE + KSIZE      # 33
N = H_OUT * W_OUT                        # 1089 valid lanes
NPAD = 9 * 128                           # 1152 lane-padded spatial axis
K1 = IN_CN * KSIZE * KSIZE               # 36  (im2col contraction)
K1P = 40                                 # contraction padded to a sublane multiple
CPG = OUT_CN // GN                       # channels per group = 4
EPS = 1e-5


# ------------------------------- Pallas kernel -------------------------------
def make_upblock_kernel(nb):
    """Kernel processing `nb` batches per grid step, each fully in VMEM."""

    def kernel(p_ref, w_ref, g_ref, gb_ref, o_ref):
        Wm = w_ref[...]                    # (C, K1P)  flipped conv-transpose weight
        G = g_ref[...]                     # (C, C)    G[c,c'] = 1 iff same group
        gamma = gb_ref[:, 0:1]             # (C, 1)
        beta = gb_ref[:, 1:2]              # (C, 1)
        count = float(N * CPG)             # GroupNorm element count (valid lanes only)

        for b in range(nb):                # static unroll (nb is 1 or 2)
            P = p_ref[b]                   # (K1P, NPAD) im2col patches (zero pad lanes)

            # ConvTranspose2d as one lane-dense MXU matmul: (C,K1P)@(K1P,NPAD).
            h = jnp.dot(Wm, P, preferred_element_type=jnp.float32)       # (C, NPAD)

            # GroupNorm: reduce-first-then-group, one-pass variance.
            # Pad lanes of h are exactly zero, so full-lane reductions are exact.
            sum_h = jnp.sum(h, axis=1, keepdims=True)                    # (C, 1)
            sum_h2 = jnp.sum(h * h, axis=1, keepdims=True)               # (C, 1)
            mean = jnp.dot(G, sum_h, preferred_element_type=jnp.float32) / count
            ex2 = jnp.dot(G, sum_h2, preferred_element_type=jnp.float32) / count
            var = ex2 - mean * mean
            inv = jax.lax.rsqrt(var + EPS)                               # (C, 1)
            hn = (h - mean) * (inv * gamma) + beta                       # (C, NPAD)

            # SiLU: x * sigmoid(x); approx reciprocal rides the otherwise-idle EUP.
            o_ref[b] = hn * pl.reciprocal(1.0 + jnp.exp(-hn), approx=True)

    return kernel


# --------------------------- one-time parameter prep ---------------------------
def prepare_params(params):
    """Hoist all parameter-only transforms out of the per-call path."""
    # PyTorch ConvTranspose2d weight is (in, out, kh, kw); flip + swap -> (out, K1).
    W = params['W']
    Wm = W[:, :, ::-1, ::-1].transpose(1, 0, 2, 3).reshape(OUT_CN, K1)
    Wm = jnp.pad(Wm, ((0, 0), (0, K1P - K1)))                           # (C, K1P)

    gidx = jnp.arange(OUT_CN) // CPG
    G = (gidx[:, None] == gidx[None, :]).astype(jnp.float32)            # (C, C)
    gb = jnp.stack([params['gamma'], params['beta']], axis=1)           # (C, 2)
    return {'Wm': jnp.asarray(Wm, jnp.float32), 'G': G, 'gb': jnp.asarray(gb, jnp.float32)}


def _batches_per_program(total_b):
    """v7x has 2 TensorCores -> keep a batch-parallel grid; v5e/v6e have 1 TC ->
    pack all batches into a single grid step (no serial grid-step overhead)."""
    try:
        kind = jax.devices()[0].device_kind.lower()
    except Exception:
        kind = ""
    if "v7" in kind:
        return 1
    return total_b


# ------------------------------- JAX glue --------------------------------------
def upblock_forward(x, prep):
    Bb = x.shape[0]
    pad = KSIZE - 1
    Hd = (H_IN - 1) * STRIDE + 1
    Wd = (W_IN - 1) * STRIDE + 1

    # ConvTranspose2d == VALID conv over the stride-dilated, (k-1)-padded input with
    # the flipped/swapped weight.  Dilation scatter + padding fused into one scatter
    # into a pre-padded zero buffer.
    xp = jnp.zeros((Bb, IN_CN, Hd + 2 * pad, Wd + 2 * pad), x.dtype)
    xp = xp.at[:, :, pad:pad + Hd:STRIDE, pad:pad + Wd:STRIDE].set(x)

    # im2col directly in (B, K1, N) order (patch element order = (c, a, b)).
    cols = []
    for a in range(KSIZE):
        for b in range(KSIZE):
            cols.append(xp[:, :, a:a + H_OUT, b:b + W_OUT])
    P = jnp.stack(cols, axis=2).reshape(Bb, K1, N)
    # Zero-pad contraction K1->K1P (sublane multiple) and lanes N->NPAD (9x128).
    P = jnp.pad(P, ((0, 0), (0, K1P - K1), (0, NPAD - N)))              # (B, K1P, NPAD)

    nb = _batches_per_program(Bb)
    grid = (Bb // nb,)

    out = pl.pallas_call(
        make_upblock_kernel(nb),
        out_shape=jax.ShapeDtypeStruct((Bb, OUT_CN, NPAD), jnp.float32),
        grid=grid,
        in_specs=[
            pl.BlockSpec((nb, K1P, NPAD), lambda i: (i, 0, 0)),
            pl.BlockSpec((OUT_CN, K1P), lambda i: (0, 0)),
            pl.BlockSpec((OUT_CN, OUT_CN), lambda i: (0, 0)),
            pl.BlockSpec((OUT_CN, 2), lambda i: (0, 0)),
        ],
        out_specs=pl.BlockSpec((nb, OUT_CN, NPAD), lambda i: (i, 0, 0)),
        compiler_params=pltpu.CompilerParams(dimension_semantics=("parallel",)),
    )(P, prep['Wm'], prep['G'], prep['gb'])

    # (B, C, N) is already NCHW channel-major: slice off lane pad, then reshape.
    return out[:, :, :N].reshape(Bb, OUT_CN, H_OUT, W_OUT)


# ---------------------------- pure-JAX reference --------------------------------
def reference_forward(x, params):
    """Independent reference: direct scatter definition of ConvTranspose2d."""
    W = params['W']
    Bb = x.shape[0]
    out = jnp.zeros((Bb, OUT_CN, H_OUT, W_OUT), jnp.float32)
    for a in range(KSIZE):
        for b in range(KSIZE):
            contrib = jnp.einsum('bchw,co->bohw', x, W[:, :, a, b],
                                 precision=jax.lax.Precision.HIGHEST)
            out = out.at[:, :, a:a + (H_IN - 1) * STRIDE + 1:STRIDE,
                               b:b + (W_IN - 1) * STRIDE + 1:STRIDE].add(contrib)
    xg = out.reshape(Bb, GN, CPG, H_OUT, W_OUT)
    mean = xg.mean(axis=(2, 3, 4), keepdims=True)
    var = ((xg - mean) ** 2).mean(axis=(2, 3, 4), keepdims=True)
    hn = ((xg - mean) / jnp.sqrt(var + EPS)).reshape(Bb, OUT_CN, H_OUT, W_OUT)
    hn = hn * params['gamma'][None, :, None, None] + params['beta'][None, :, None, None]
    return hn * jax.nn.sigmoid(hn)


# ----------------------------------- main ---------------------------------------
if __name__ == "__main__":
    key = jax.random.PRNGKey(0)
    kx, kw, kg, kb = jax.random.split(key, 4)
    x = jax.random.normal(kx, (B, IN_CN, H_IN, W_IN), jnp.float32)
    params = {
        'W': jax.random.normal(kw, (IN_CN, OUT_CN, KSIZE, KSIZE), jnp.float32)
             / np.sqrt(IN_CN * KSIZE * KSIZE),
        'gamma': 1.0 + 0.1 * jax.random.normal(kg, (OUT_CN,), jnp.float32),
        'beta': 0.1 * jax.random.normal(kb, (OUT_CN,), jnp.float32),
    }

    prep = prepare_params(params)                     # hoisted, one-time
    forward = jax.jit(upblock_forward)                # fuse the wrapper glue

    out = jax.block_until_ready(forward(x, prep))
    ref = jax.block_until_ready(reference_forward(x, params))

    assert out.shape == (B, OUT_CN, H_OUT, W_OUT), out.shape
    err = float(jnp.max(jnp.abs(out - ref)))
    assert err < 2e-2, f"max abs error too large: {err}"
    print("KERNEL_OK")
</pallas_src>

<mosaic_0001>
module attributes {stable_mosaic.version = 11 : i64} {
  func.func @kernel(%arg0: i32, %arg1: memref<2x40x1152xf32, #tpu.memory_space<vmem>>, %arg2: memref<32x40xf32, #tpu.memory_space<vmem>>, %arg3: memref<32x32xf32, #tpu.memory_space<vmem>>, %arg4: memref<32x2xf32, #tpu.memory_space<vmem>>, %arg5: memref<2x32x1152xf32, #tpu.memory_space<vmem>>) attributes {dimension_semantics = [#tpu.dimension_semantics<parallel>], iteration_bounds = array<i64: 1>, scalar_prefetch = 0 : i64, scratch_operands = 0 : i64, tpu.core_type = #tpu.core_type<tc>, window_params = [{transform_indices = @transform_0, window_bounds = array<i64: 2, 40, 1152>}, {pipeline_mode = #tpu.pipeline_mode<synchronous>, transform_indices = @transform_1, window_bounds = array<i64: 32, 40>}, {pipeline_mode = #tpu.pipeline_mode<synchronous>, transform_indices = @transform_2, window_bounds = array<i64: 32, 32>}, {pipeline_mode = #tpu.pipeline_mode<synchronous>, transform_indices = @transform_3, window_bounds = array<i64: 32, 2>}, {transform_indices = @transform_4, window_bounds = array<i64: 2, 32, 1152>}]} {
    %c0 = arith.constant 0 : index
    %c0_0 = arith.constant 0 : index
    %0 = vector.load %arg2[%c0, %c0_0] : memref<32x40xf32, #tpu.memory_space<vmem>>, vector<32x40xf32>
    %c0_1 = arith.constant 0 : index
    %c0_2 = arith.constant 0 : index
    %1 = vector.load %arg3[%c0_1, %c0_2] : memref<32x32xf32, #tpu.memory_space<vmem>>, vector<32x32xf32>
    %c0_3 = arith.constant 0 : index
    %c0_4 = arith.constant 0 : index
    %2 = vector.load %arg4[%c0_3, %c0_4] : memref<32x2xf32, #tpu.memory_space<vmem>>, vector<32x1xf32>
    %c0_5 = arith.constant 0 : index
    %c1 = arith.constant 1 : index
    %3 = vector.load %arg4[%c0_5, %c1] : memref<32x2xf32, #tpu.memory_space<vmem>>, vector<32x1xf32>
    %c0_6 = arith.constant 0 : index
    %c0_7 = arith.constant 0 : index
    %c0_8 = arith.constant 0 : index
    %4 = vector.load %arg1[%c0_6, %c0_7, %c0_8] : memref<2x40x1152xf32, #tpu.memory_space<vmem>>, vector<1x40x1152xf32>
    %5 = vector.shape_cast %4 : vector<1x40x1152xf32> to vector<40x1152xf32>
    %cst = arith.constant dense<0.000000e+00> : vector<32x1152xf32>
    %6 = tpu.matmul %0, %5, %cst {dimension_numbers = #tpu.dot_dimension_numbers<[1], [0], [0], [1], [0, 0, 1, 1], [], []>} : vector<32x40xf32>, vector<40x1152xf32>, vector<32x1152xf32> -> vector<32x1152xf32>
    %cst_9 = arith.constant dense<0.000000e+00> : vector<32xf32>
    %7 = vector.multi_reduction <add>, %6, %cst_9 [1] : vector<32x1152xf32> to vector<32xf32>
    %8 = vector.shape_cast %7 : vector<32xf32> to vector<32x1xf32>
    %9 = arith.mulf %6, %6 : vector<32x1152xf32>
    %cst_10 = arith.constant dense<0.000000e+00> : vector<32xf32>
    %10 = vector.multi_reduction <add>, %9, %cst_10 [1] : vector<32x1152xf32> to vector<32xf32>
    %11 = vector.shape_cast %10 : vector<32xf32> to vector<32x1xf32>
    %cst_11 = arith.constant dense<0.000000e+00> : vector<32x1xf32>
    %12 = tpu.matmul %1, %8, %cst_11 {dimension_numbers = #tpu.dot_dimension_numbers<[1], [0], [0], [1], [0, 0, 1, 1], [], []>} : vector<32x32xf32>, vector<32x1xf32>, vector<32x1xf32> -> vector<32x1xf32>
    %cst_12 = arith.constant 4.356000e+03 : f32
    %13 = vector.broadcast %cst_12 : f32 to vector<32x1xf32>
    %14 = arith.divf %12, %13 : vector<32x1xf32>
    %cst_13 = arith.constant dense<0.000000e+00> : vector<32x1xf32>
    %15 = tpu.matmul %1, %11, %cst_13 {dimension_numbers = #tpu.dot_dimension_numbers<[1], [0], [0], [1], [0, 0, 1, 1], [], []>} : vector<32x32xf32>, vector<32x1xf32>, vector<32x1xf32> -> vector<32x1xf32>
    %cst_14 = arith.constant 4.356000e+03 : f32
    %16 = vector.broadcast %cst_14 : f32 to vector<32x1xf32>
    %17 = arith.divf %15, %16 : vector<32x1xf32>
    %18 = arith.mulf %14, %14 : vector<32x1xf32>
    %19 = arith.subf %17, %18 : vector<32x1xf32>
    %cst_15 = arith.constant 9.99999974E-6 : f32
    %20 = vector.broadcast %cst_15 : f32 to vector<32x1xf32>
    %21 = arith.addf %19, %20 : vector<32x1xf32>
    %22 = math.rsqrt %21 : vector<32x1xf32>
    %23 = vector.broadcast %14 : vector<32x1xf32> to vector<32x1152xf32>
    %24 = arith.subf %6, %23 : vector<32x1152xf32>
    %25 = arith.mulf %22, %2 : vector<32x1xf32>
    %26 = vector.broadcast %25 : vector<32x1xf32> to vector<32x1152xf32>
    %27 = arith.mulf %24, %26 : vector<32x1152xf32>
    %28 = vector.broadcast %3 : vector<32x1xf32> to vector<32x1152xf32>
    %29 = arith.addf %27, %28 : vector<32x1152xf32>
    %cst_16 = arith.constant 0.000000e+00 : f32
    %30 = vector.broadcast %cst_16 : f32 to vector<32x1152xf32>
    %31 = arith.subf %30, %29 : vector<32x1152xf32>
    %32 = math.exp %31 : vector<32x1152xf32>
    %cst_17 = arith.constant 1.000000e+00 : f32
    %33 = vector.broadcast %cst_17 : f32 to vector<32x1152xf32>
    %34 = arith.addf %33, %32 : vector<32x1152xf32>
    %35 = tpu.reciprocal %34 {approx = true} : vector<32x1152xf32> -> vector<32x1152xf32>
    %36 = arith.mulf %29, %35 : vector<32x1152xf32>
    %c0_18 = arith.constant 0 : index
    %c0_19 = arith.constant 0 : index
    %c0_20 = arith.constant 0 : index
    %37 = vector.load %arg5[%c0_18, %c0_19, %c0_20] : memref<2x32x1152xf32, #tpu.memory_space<vmem>>, vector<1x32x1152xf32>
    %38 = vector.shape_cast %37 : vector<1x32x1152xf32> to vector<32x1152xf32>
    %39 = vector.shape_cast %36 : vector<32x1152xf32> to vector<1x32x1152xf32>
    tpu.vector_store %arg5[%c0_18, %c0_19, %c0_20], %39 {strides = array<i32>} : memref<2x32x1152xf32, #tpu.memory_space<vmem>>, vector<1x32x1152xf32>,
    %c1_21 = arith.constant 1 : index
    %c0_22 = arith.constant 0 : index
    %c0_23 = arith.constant 0 : index
    %40 = vector.load %arg1[%c1_21, %c0_22, %c0_23] : memref<2x40x1152xf32, #tpu.memory_space<vmem>>, vector<1x40x1152xf32>
    %41 = vector.shape_cast %40 : vector<1x40x1152xf32> to vector<40x1152xf32>
    %cst_24 = arith.constant dense<0.000000e+00> : vector<32x1152xf32>
    %42 = tpu.matmul %0, %41, %cst_24 {dimension_numbers = #tpu.dot_dimension_numbers<[1], [0], [0], [1], [0, 0, 1, 1], [], []>} : vector<32x40xf32>, vector<40x1152xf32>, vector<32x1152xf32> -> vector<32x1152xf32>
    %cst_25 = arith.constant dense<0.000000e+00> : vector<32xf32>
    %43 = vector.multi_reduction <add>, %42, %cst_25 [1] : vector<32x1152xf32> to vector<32xf32>
    %44 = vector.shape_cast %43 : vector<32xf32> to vector<32x1xf32>
    %45 = arith.mulf %42, %42 : vector<32x1152xf32>
    %cst_26 = arith.constant dense<0.000000e+00> : vector<32xf32>
    %46 = vector.multi_reduction <add>, %45, %cst_26 [1] : vector<32x1152xf32> to vector<32xf32>
    %47 = vector.shape_cast %46 : vector<32xf32> to vector<32x1xf32>
    %cst_27 = arith.constant dense<0.000000e+00> : vector<32x1xf32>
    %48 = tpu.matmul %1, %44, %cst_27 {dimension_numbers = #tpu.dot_dimension_numbers<[1], [0], [0], [1], [0, 0, 1, 1], [], []>} : vector<32x32xf32>, vector<32x1xf32>, vector<32x1xf32> -> vector<32x1xf32>
    %cst_28 = arith.constant 4.356000e+03 : f32
    %49 = vector.broadcast %cst_28 : f32 to vector<32x1xf32>
    %50 = arith.divf %48, %49 : vector<32x1xf32>
    %cst_29 = arith.constant dense<0.000000e+00> : vector<32x1xf32>
    %51 = tpu.matmul %1, %47, %cst_29 {dimension_numbers = #tpu.dot_dimension_numbers<[1], [0], [0], [1], [0, 0, 1, 1], [], []>} : vector<32x32xf32>, vector<32x1xf32>, vector<32x1xf32> -> vector<32x1xf32>
    %cst_30 = arith.constant 4.356000e+03 : f32
    %52 = vector.broadcast %cst_30 : f32 to vector<32x1xf32>
    %53 = arith.divf %51, %52 : vector<32x1xf32>
    %54 = arith.mulf %50, %50 : vector<32x1xf32>
    %55 = arith.subf %53, %54 : vector<32x1xf32>
    %cst_31 = arith.constant 9.99999974E-6 : f32
    %56 = vector.broadcast %cst_31 : f32 to vector<32x1xf32>
    %57 = arith.addf %55, %56 : vector<32x1xf32>
    %58 = math.rsqrt %57 : vector<32x1xf32>
    %59 = vector.broadcast %50 : vector<32x1xf32> to vector<32x1152xf32>
    %60 = arith.subf %42, %59 : vector<32x1152xf32>
    %61 = arith.mulf %58, %2 : vector<32x1xf32>
    %62 = vector.broadcast %61 : vector<32x1xf32> to vector<32x1152xf32>
    %63 = arith.mulf %60, %62 : vector<32x1152xf32>
    %64 = vector.broadcast %3 : vector<32x1xf32> to vector<32x1152xf32>
    %65 = arith.addf %63, %64 : vector<32x1152xf32>
    %cst_32 = arith.constant 0.000000e+00 : f32
    %66 = vector.broadcast %cst_32 : f32 to vector<32x1152xf32>
    %67 = arith.subf %66, %65 : vector<32x1152xf32>
    %68 = math.exp %67 : vector<32x1152xf32>
    %cst_33 = arith.constant 1.000000e+00 : f32
    %69 = vector.broadcast %cst_33 : f32 to vector<32x1152xf32>
    %70 = arith.addf %69, %68 : vector<32x1152xf32>
    %71 = tpu.reciprocal %70 {approx = true} : vector<32x1152xf32> -> vector<32x1152xf32>
    %72 = arith.mulf %65, %71 : vector<32x1152xf32>
    %c1_34 = arith.constant 1 : index
    %c0_35 = arith.constant 0 : index
    %c0_36 = arith.constant 0 : index
    %73 = vector.load %arg5[%c1_34, %c0_35, %c0_36] : memref<2x32x1152xf32, #tpu.memory_space<vmem>>, vector<1x32x1152xf32>
    %74 = vector.shape_cast %73 : vector<1x32x1152xf32> to vector<32x1152xf32>
    %75 = vector.shape_cast %72 : vector<32x1152xf32> to vector<1x32x1152xf32>
    tpu.vector_store %arg5[%c1_34, %c0_35, %c0_36], %75 {strides = array<i32>} : memref<2x32x1152xf32, #tpu.memory_space<vmem>>, vector<1x32x1152xf32>,
    return
  }
  func.func @transform_0(%arg0: i32) -> (i32, i32, i32) {
    %c0_i32 = arith.constant 0 : i32
    %c0_i32_0 = arith.constant 0 : i32
    %c0_i32_1 = arith.constant 0 : i32
    return %arg0, %c0_i32, %c0_i32_0 : i32, i32, i32
  }
  func.func @transform_1(%arg0: i32) -> (i32, i32) {
    %c0_i32 = arith.constant 0 : i32
    %c0_i32_0 = arith.constant 0 : i32
    %c0_i32_1 = arith.constant 0 : i32
    return %c0_i32, %c0_i32_0 : i32, i32
  }
  func.func @transform_2(%arg0: i32) -> (i32, i32) {
    %c0_i32 = arith.constant 0 : i32
    %c0_i32_0 = arith.constant 0 : i32
    %c0_i32_1 = arith.constant 0 : i32
    return %c0_i32, %c0_i32_0 : i32, i32
  }
  func.func @transform_3(%arg0: i32) -> (i32, i32) {
    %c0_i32 = arith.constant 0 : i32
    %c0_i32_0 = arith.constant 0 : i32
    %c0_i32_1 = arith.constant 0 : i32
    return %c0_i32, %c0_i32_0 : i32, i32
  }
  func.func @transform_4(%arg0: i32) -> (i32, i32, i32) {
    %c0_i32 = arith.constant 0 : i32
    %c0_i32_0 = arith.constant 0 : i32
    %c0_i32_1 = arith.constant 0 : i32
    return %arg0, %c0_i32, %c0_i32_0 : i32, i32, i32
  }
}

</mosaic_0001>

<bundles_post_ra>
// kernel: upblock_forward.1
= control target key start
LH: loop header
LB: loop body
LE: loop exit
PB: predicated region body
PF: predicated region fallthrough
CT: control target
= control target key end

     0   :  { %v3185_v3 = vmov 0.0   ;;  %vm74_vm0 = vcmask 326656   ;;  %vm644_vm1 = vcmask 261120   ;;  %s5104_s0 = inlined_call_operand.vmem [shape: f32[2,40,1152], index: 0, kind: input, shape index: {}]   ;;  %s5105_s1 = inlined_call_operand.vmem [shape: f32[32,40], index: 1, kind: input, shape index: {}]   ;;  %s5106_s2 = inlined_call_operand.vmem [shape: f32[32,32], index: 2, kind: input, shape index: {}]   ;;  %s5107_s3 = inlined_call_operand.vmem [shape: f32[32,2], index: 3, kind: input, shape index: {}]   ;;  %s5108_s4 = inlined_call_operand.vmem [shape: f32[2,32,1152], index: 4, kind: output, shape index: {}]  }
   0x1   :  { %v30_v0 = vld [vmem:[%s5104_s0 + $0x8] sm:$0xff]  ;;  %v39_v1 = vld [vmem:[%s5104_s0 + $0x50] sm:$0xff]  ;;  %v29_v2 = vld [vmem:[%s5104_s0] sm:$0xff]  ;;  %151 = vmatprep.mubr.f32.mxu0 %v3185_v3  ;;  %240 = vmatprep.mubr.f32.mxu1 %v3185_v3 }
   0x2   :  { %v2757_v4 = vpack.c.bf16 %v39_v1, %v30_v0  ;;  %v38_v5 = vld [vmem:[%s5104_s0 + $0x48] sm:$0xff]  ;;  %v32_v6 = vld [vmem:[%s5104_s0 + $0x18] sm:$0xff]  ;;  %v41_v7 = vld [vmem:[%s5104_s0 + $0x60] sm:$0xff] }
   0x3   :  { %v2759_v8 = vpack.c.bf16 %v38_v5, %v29_v2  ;;  %v2765_v9 = vpack.c.bf16 %v41_v7, %v32_v6  ;;  %v48_v10 = vld [vmem:[%s5104_s0 + $0x98] sm:$0xff]  ;;  %v57_v11 = vld [vmem:[%s5104_s0 + $0xe0] sm:$0xff]  ;;  %v31_v12 = vld [vmem:[%s5104_s0 + $0x10] sm:$0xff] }
   0x4   :  { %2758 = vmatprep.subr.bf16.mxu0 %v2757_v4  ;;  %v2761_v13 = vpack.c.bf16 %v57_v11, %v48_v10  ;;  %v40_v14 = vld [vmem:[%s5104_s0 + $0x58] sm:$0xff]  ;;  %v47_v15 = vld [vmem:[%s5104_s0 + $0x90] sm:$0xff]  ;;  %v50_v19 = vld [vmem:[%s5104_s0 + $0xa8] sm:$0xff] }
   0x5   :  { %v56_v16 = vld [vmem:[%s5104_s0 + $0xd8] sm:$0xff]  ;;  %2760 = vmatpush1.bf16.msra.mxu0 %v2759_v8  ;;  %2766 = vmatprep.subr.bf16.mxu1 %v2765_v9  ;;  %v2767_v17 = vpack.c.bf16 %v40_v14, %v31_v12  ;;  %v59_v20 = vld [vmem:[%s5104_s0 + $0xf0] sm:$0xff]  ;;  %v49_v22 = vld [vmem:[%s5104_s0 + $0xa0] sm:$0xff] }
   0x6   :  { %v2763_v18 = vpack.c.bf16 %v56_v16, %v47_v15  ;;  %2762 = vmatprep.subr.bf16.mxu0 %v2761_v13  ;;  %v2769_v21 = vpack.c.bf16 %v59_v20, %v50_v19  ;;  %v58_v23 = vld [vmem:[%s5104_s0 + $0xe8] sm:$0xff]  ;;  %v43_v27 = vld [vmem:[%s5104_s0 + $0x70] sm:$0xff]  ;;  %v68_v28 = vld [vmem:[%s5104_s0 + $0x138] sm:$0xff] }
   0x7   :  { %2768 = vmatpush1.bf16.msra.mxu1 %v2767_v17  ;;  %v66_v24 = vld [vmem:[%s5104_s0 + $0x128] sm:$0xff]  ;;  %v2771_v25 = vpack.c.bf16 %v58_v23, %v49_v22  ;;  %v33_v29 = vld [vmem:[%s5104_s0 + $0x20] sm:$0xff]  ;;  %v52_v33 = vld [vmem:[%s5104_s0 + $0xb8] sm:$0xff] }
   0x8   :  { %2770 = vmatprep.subr.bf16.mxu1 %v2769_v21  ;;  %v34_v26 = vld [vmem:[%s5104_s0 + $0x28] sm:$0xff]  ;;  %v65_v31 = vld [vmem:[%s5104_s0 + $0x120] sm:$0xff]  ;;  %v36_v36 = vld [vmem:[%s5104_s0 + $0x38] sm:$0xff] }
   0x9   :  { %2764 = vmatpush1.bf16.msra.mxu0 %v2763_v18  ;;  %v42_v30 = vld [vmem:[%s5104_s0 + $0x68] sm:$0xff]  ;;  %v2773_v32 = vpack.c.bf16 %v43_v27, %v34_v26  ;;  %v61_v34 = vld [vmem:[%s5104_s0 + $0x100] sm:$0xff]  ;;  %v67_v38 = vld [vmem:[%s5104_s0 + $0x130] sm:$0xff] }
   0xa   :  { %95 = vmatprep.subr.mxu0 %v66_v24  ;;  %v3293_v35 = vld [vmem:[%s5105_s1] sm:$0xff]  ;;  %v2775_v39 = vpack.c.bf16 %v42_v30, %v33_v29  ;;  %v35_v40 = vld [vmem:[%s5104_s0 + $0x30] sm:$0xff]  ;;  %v44_v41 = vld [vmem:[%s5104_s0 + $0x78] sm:$0xff]  ;;  %v2777_v42 = vpack.c.bf16 %v61_v34, %v52_v33 }
   0xb   :  { %2772 = vmatpush1.bf16.msra.mxu1 %v2771_v25  ;;  %v45_v37 = vld [vmem:[%s5104_s0 + $0x80] sm:$0xff]  ;;  %v51_v43 = vld [vmem:[%s5104_s0 + $0xb0] sm:$0xff]  ;;  %v60_v44 = vld [vmem:[%s5104_s0 + $0xf8] sm:$0xff]  ;;  %v2783_v47 = vpack.c.bf16 %v44_v41, %v35_v40 }
   0xc   :  { %184 = vmatprep.subr.mxu1 %v68_v28  ;;  %v2781_v45 = vpack.c.bf16 %v45_v37, %v36_v36  ;;  %v3322_v46 = vld [vmem:[%s5105_s1 + $0x8] sm:$0xff]  ;;  %v63_v49 = vld [vmem:[%s5104_s0 + $0x110] sm:$0xff]  ;;  %v2779_v50 = vpack.c.bf16 %v60_v44, %v51_v43  ;;  %v53_v51 = vld [vmem:[%s5104_s0 + $0xc0] sm:$0xff] }
   0xd   :  { %96 = vmatpush1.msra.mxu0 %v65_v31  ;;  %v54_v48 = vld [vmem:[%s5104_s0 + $0xc8] sm:$0xff]  ;;  %v3348_v55 = vld [vmem:[%s5105_s1 + $0x10] sm:$0xff]  ;;  %v37_v57 = vld [vmem:[%s5104_s0 + $0x40] sm:$0xff] }
   0xe   :  { %2482 = vmatmul.mubr.msk.f32.vlgmr.msra.gmra.mrb[0].mxu0 %vm74_vm0, %v3293_v35  ;;  %2774 = vmatprep.subr.bf16.mxu0 %v2773_v32  ;;  %v62_v52 = vld [vmem:[%s5104_s0 + $0x108] sm:$0xff]  ;;  %v2785_v54 = vpack.c.bf16 %v63_v49, %v54_v48  ;;  %v69_v59 = vld [vmem:[%s5104_s0 + $0x140] sm:$0xff]  ;;  %v72_v60 = vld [vmem:[%s5104_s0 + $0x158] sm:$0xff] }
   0xf   :  { %185 = vmatpush1.msra.mxu1 %v67_v38  ;;  %157 = vmatprep.mubr.f32.mxu0 %v3185_v3  ;;  %v70_v53 = vld [vmem:[%s5104_s0 + $0x148] sm:$0xff]  ;;  %v2787_v56 = vpack.c.bf16 %v62_v52, %v53_v51  ;;  %v3371_v62 = vld [vmem:[%s5105_s1 + $0x18] sm:$0xff]  ;;  %v71_v63 = vld [vmem:[%s5104_s0 + $0x150] sm:$0xff] }
  0x10   :  { %2486 = vmatmul.mubr.msk.f32.vlgmr.msra.gmra.mrb[0].mxu1 %vm74_vm0, %v3293_v35  ;;  %2776 = vmatpush1.bf16.msra.mxu0 %v2775_v39  ;;  %v46_v58 = vld [vmem:[%s5104_s0 + $0x88] sm:$0xff]  ;;  %v55_v0 = vld [vmem:[%s5104_s0 + $0xd0] sm:$0xff]  ;;  %v64_v1 = vld [vmem:[%s5104_s0 + $0x118] sm:$0xff] }
  0x11   :  { %246 = vmatprep.mubr.f32.mxu1 %v3185_v3  ;;  %2778 = vmatprep.subr.bf16.mxu0 %v2777_v42  ;;  %v2789_v61 = vpack.c.bf16 %v46_v58, %v37_v57  ;;  %v2793_v2 = vpack.c.bf16 %v64_v1, %v55_v0  ;;  %v73_v4 = vld [vmem:[%s5104_s0 + $0x160] sm:$0xff] }
  0x12   :  { %2483 = vmatmul.mubr.msk.f32.gmra.mrb[2].mxu0 %vm74_vm0, %v3322_v46  ;;  %2782 = vmatprep.subr.bf16.mxu1 %v2781_v45 }
  0x13   :  { %163 = vmatprep.mubr.f32.mxu0 %v3185_v3  ;;  %2784 = vmatpush1.bf16.msra.mxu1 %v2783_v47 }
  0x14   :  { %2487 = vmatmul.mubr.msk.f32.gmra.mrb[2].mxu1 %vm74_vm0, %v3322_v46  ;;  %2780 = vmatpush1.bf16.msra.mxu0 %v2779_v50 }
  0x15   :  { %252 = vmatprep.mubr.f32.mxu1 %v3185_v3  ;;  %273 = vmatprep.subr.mxu0 %v70_v53 }
  0x16   :  { %2484 = vmatmul.mubr.msk.f32.gmra.mrb[4].mxu0 %vm74_vm0, %v3348_v55  ;;  %2786 = vmatprep.subr.bf16.mxu1 %v2785_v54 }
  0x17   :  { %169 = vmatprep.mubr.f32.mxu0 %v3185_v3  ;;  %2788 = vmatpush1.bf16.msra.mxu1 %v2787_v56 }
  0x18   :  { %2488 = vmatmul.mubr.msk.f32.gmra.mrb[4].mxu1 %vm74_vm0, %v3348_v55  ;;  %274 = vmatpush1.msra.mxu0 %v69_v59 }
  0x19   :  { %258 = vmatprep.mubr.f32.mxu1 %v3185_v3  ;;  %362 = vmatprep.subr.mxu1 %v72_v60 }
  0x1a   :  { %2485 = vmatmul.mubr.msk.f32.gmra.mrb[6].mxu0 %vm74_vm0, %v3371_v62  ;;  %2790 = vmatprep.subr.bf16.mxu0 %v2789_v61 }
  0x1b   :  { %329 = vmatprep.mubr.f32.mxu0 %v3185_v3  ;;  %363 = vmatpush1.msra.mxu1 %v71_v63 }
  0x1c   :  { %2489 = vmatmul.mubr.msk.f32.gmra.mrb[6].mxu1 %vm74_vm0, %v3371_v62 }
  0x1d   :  { %418 = vmatprep.mubr.f32.mxu1 %v3185_v3 }
  0x1e   :  { %2490 = vmatmul.mubr.msk.f32.vlgmr.msra.gmra.mrb[8].mxu0 %vm74_vm0, %v3293_v35 }
  0x1f   :  { %335 = vmatprep.mubr.f32.mxu0 %v3185_v3  ;;  %2792 = vmatpush3.bf16.msra.mxu0 %v2789_v61 }
  0x20   :  { %2494 = vmatmul.mubr.msk.f32.vlgmr.msra.gmra.mrb[8].mxu1 %vm74_vm0, %v3293_v35  ;;  %2794 = vmatprep.subr.bf16.mxu0 %v2793_v2 }
  0x21   :  { %424 = vmatprep.mubr.f32.mxu1 %v3185_v3 }
  0x22   :  { %2491 = vmatmul.mubr.msk.f32.gmra.mrb[10].mxu0 %vm74_vm0, %v3322_v46 }
  0x23   :  { %341 = vmatprep.mubr.f32.mxu0 %v3185_v3  ;;  %2796 = vmatpush3.bf16.msra.mxu0 %v2793_v2 }
  0x24   :  { %2495 = vmatmul.mubr.msk.f32.gmra.mrb[10].mxu1 %vm74_vm0, %v3322_v46  ;;  %2677 = vmatprep.subr.mxu0 %v73_v4 }
  0x25   :  { %430 = vmatprep.mubr.f32.mxu1 %v3185_v3 }
  0x26   :  { %2492 = vmatmul.mubr.msk.f32.gmra.mrb[12].mxu0 %vm74_vm0, %v3348_v55 }
  0x27   :  { %347 = vmatprep.mubr.f32.mxu0 %v3185_v3  ;;  %2678 = vmatpush3.msra.mxu0 %v73_v4 }
  0x28   :  { %2496 = vmatmul.mubr.msk.f32.gmra.mrb[12].mxu1 %vm74_vm0, %v3348_v55 }
  0x29   :  { %436 = vmatprep.mubr.f32.mxu1 %v3185_v3 }
  0x2a   :  { %2493 = vmatmul.mubr.msk.f32.gmra.mrb[14].mxu0 %vm74_vm0, %v3371_v62 }
  0x2b   :  { %2679 = vmatprep.mubr.msk.f32.mxu0 %vm74_vm0, %v3293_v35 }
  0x2c   :  { %2497 = vmatmul.mubr.msk.f32.gmra.mrb[14].mxu1 %vm74_vm0, %v3371_v62 }
  0x2e   :  { %2680 = vmatmul.mubr.msk.f32.vlgmr.msra.gmra.mrb[16].mxu0 %vm74_vm0, %v3322_v46 }
  0x2f   :  { %2682 = vmatprep.mubr.msk.f32.mxu0 %vm74_vm0, %v3348_v55 }
  0x32   :  { %2683 = vmatmul.mubr.msk.f32.gmra.mrb[18].mxu0 %vm74_vm0, %v3371_v62 }
  0xe1   :  { %v3424_v5 = vpop.f32.mrb[0].mxu0 }
  0xe2   :  { %5193 = vst [vmem:[#allocation2_spill] sm:$0xff] %v3424_v5  ;;  %v568_v6 = vmul.f32 %v3424_v5, %v3424_v5  ;;  %v3428_v7 = vpop.f32.mrb[1].mxu0 }
  0xe3   :  { %5194 = vst [vmem:[#allocation3_spill] sm:$0xff] %v3428_v7  ;;  %v528_v8 = vadd.f32 %v3428_v7, %v3424_v5  ;;  %v569_v9 = vmul.f32 %v3428_v7, %v3428_v7  ;;  %v3434_v10 = vpop.f32.mrb[0].mxu1 }
  0xe4   :  { %5195 = vst [vmem:[#allocation4_spill] sm:$0xff] %v3434_v10  ;;  %v570_v11 = vmul.f32 %v3434_v10, %v3434_v10  ;;  %v3438_v12 = vpop.f32.mrb[1].mxu1 }
  0xe5   :  { %5196 = vst [vmem:[#allocation5_spill] sm:$0xff] %v3438_v12  ;;  %v604_v13 = vadd.f32 %v569_v9, %v568_v6  ;;  %v529_v14 = vadd.f32 %v528_v8, %v3434_v10  ;;  %v3441_v15 = vpop.f32.mrb[2].mxu0  ;;  %v571_v16 = vmul.f32 %v3438_v12, %v3438_v12 }
  0xe6   :  { %v577_v17 = vmul.f32 %v3441_v15, %v3441_v15  ;;  %v3447_v18 = vpop.f32.mrb[3].mxu0 }
  0xe7   :  { %v605_v19 = vadd.f32 %v604_v13, %v570_v11  ;;  %v538_v20 = vadd.f32 %v3447_v18, %v3441_v15  ;;  %v578_v21 = vmul.f32 %v3447_v18, %v3447_v18  ;;  %v530_v22 = vadd.f32 %v529_v14, %v3438_v12  ;;  %v3454_v23 = vpop.f32.mrb[2].mxu1 }
  0xe8   :  { %v579_v24 = vmul.f32 %v3454_v23, %v3454_v23  ;;  %v3458_v25 = vpop.f32.mrb[3].mxu1 }
  0xe9   :  { %v614_v26 = vadd.f32 %v578_v21, %v577_v17  ;;  %v606_v27 = vadd.f32 %v605_v19, %v571_v16  ;;  %v539_v28 = vadd.f32 %v538_v20, %v3454_v23  ;;  %v3461_v29 = vpop.f32.mrb[4].mxu0  ;;  %v580_v30 = vmul.f32 %v3458_v25, %v3458_v25 }
  0xea   :  { %v586_v31 = vmul.f32 %v3461_v29, %v3461_v29  ;;  %v3467_v32 = vpop.f32.mrb[5].mxu0 }
  0xeb   :  { %v615_v33 = vadd.f32 %v614_v26, %v579_v24  ;;  %v548_v34 = vadd.f32 %v3467_v32, %v3461_v29  ;;  %v587_v36 = vmul.f32 %v3467_v32, %v3467_v32  ;;  %v540_v37 = vadd.f32 %v539_v28, %v3458_v25  ;;  %v3474_v38 = vpop.f32.mrb[4].mxu1 }
  0xec   :  { %v588_v39 = vmul.f32 %v3474_v38, %v3474_v38  ;;  %v3478_v40 = vpop.f32.mrb[5].mxu1 }
  0xed   :  { %v624_v41 = vadd.f32 %v587_v36, %v586_v31  ;;  %v616_v42 = vadd.f32 %v615_v33, %v580_v30  ;;  %v549_v43 = vadd.f32 %v548_v34, %v3474_v38  ;;  %v3481_v44 = vpop.f32.mrb[6].mxu0  ;;  %v589_v45 = vmul.f32 %v3478_v40, %v3478_v40 }
  0xee   :  { %5197 = vst [vmem:[#allocation6_spill] sm:$0xff] %v3481_v44  ;;  %v595_v47 = vmul.f32 %v3481_v44, %v3481_v44  ;;  %v3487_v48 = vpop.f32.mrb[7].mxu0 }
  0xef   :  { %5198 = vst [vmem:[#allocation7_spill] sm:$0xff] %v3487_v48  ;;  %v625_v49 = vadd.f32 %v624_v41, %v588_v39  ;;  %v558_v50 = vadd.f32 %v3487_v48, %v3481_v44  ;;  %v596_v51 = vmul.f32 %v3487_v48, %v3487_v48  ;;  %v550_v52 = vadd.f32 %v549_v43, %v3478_v40  ;;  %v3494_v53 = vpop.f32.mrb[6].mxu1 }
  0xf0   :  { %5199 = vst [vmem:[#allocation8_spill] sm:$0xff] %v3494_v53  ;;  %v597_v54 = vmul.f32 %v3494_v53, %v3494_v53  ;;  %v3498_v56 = vpop.f32.mrb[7].mxu1 }
  0xf1   :  { %5200 = vst [vmem:[#allocation9_spill] sm:$0xff] %v3498_v56  ;;  %v634_v57 = vadd.f32 %v596_v51, %v595_v47  ;;  %v626_v58 = vadd.f32 %v625_v49, %v589_v45  ;;  %v559_v59 = vadd.f32 %v558_v50, %v3494_v53  ;;  %v3501_v60 = vpop.f32.mrb[8].mxu0  ;;  %v598_v61 = vmul.f32 %v3498_v56, %v3498_v56 }
  0xf2   :  { %5201 = vst [vmem:[#allocation10_spill] sm:$0xff] %v3501_v60  ;;  %v531_v63 = vadd.f32 %v530_v22, %v3501_v60  ;;  %v572_v0 = vmul.f32 %v3501_v60, %v3501_v60  ;;  %v3508_v1 = vpop.f32.mrb[9].mxu0 }
  0xf3   :  { %5202 = vst [vmem:[#allocation11_spill] sm:$0xff] %v3508_v1  ;;  %v635_v2 = vadd.f32 %v634_v57, %v597_v54  ;;  %v560_v4 = vadd.f32 %v559_v59, %v3498_v56  ;;  %v573_v6 = vmul.f32 %v3508_v1, %v3508_v1  ;;  %v3513_v8 = vpop.f32.mrb[8].mxu1 }
  0xf4   :  { %5203 = vst [vmem:[#allocation12_spill] sm:$0xff] %v3513_v8  ;;  %v607_v9 = vadd.f32 %v606_v27, %v572_v0  ;;  %v532_v11 = vadd.f32 %v531_v63, %v3508_v1  ;;  %v3516_v13 = vpop.f32.mrb[9].mxu1  ;;  %v574_v17 = vmul.f32 %v3513_v8, %v3513_v8 }
  0xf5   :  { %5204 = vst [vmem:[#allocation13_spill] sm:$0xff] %v3516_v13  ;;  %v636_v14 = vadd.f32 %v635_v2, %v598_v61  ;;  %v3518_v16 = vpop.f32.mrb[10].mxu0  ;;  %v575_v27 = vmul.f32 %v3516_v13, %v3516_v13 }
  0xf6   :  { %v608_v19 = vadd.f32 %v607_v9, %v573_v6  ;;  %v541_v20 = vadd.f32 %v540_v37, %v3518_v16  ;;  %v581_v21 = vmul.f32 %v3518_v16, %v3518_v16  ;;  %v533_v22 = vadd.f32 %v532_v11, %v3513_v8  ;;  %v3526_v24 = vpop.f32.mrb[11].mxu0 }
  0xf7   :  { %v582_v26 = vmul.f32 %v3526_v24, %v3526_v24  ;;  %v3532_v28 = vpop.f32.mrb[10].mxu1 }
  0xf8   :  { %v617_v30 = vadd.f32 %v616_v42, %v581_v21  ;;  %v542_v31 = vadd.f32 %v541_v20, %v3526_v24  ;;  %v3535_v33 = vpop.f32.mrb[11].mxu1  ;;  %v534_v34 = vadd.f32 %v533_v22, %v3516_v13  ;;  %v583_v37 = vmul.f32 %v3532_v28, %v3532_v28 }
  0xf9   :  { %v3538_v36 = vpop.f32.mrb[12].mxu0  ;;  %v609_v39 = vadd.f32 %v608_v19, %v574_v17  ;;  %v584_v50 = vmul.f32 %v3535_v33, %v3535_v33 }
  0xfa   :  { %v618_v41 = vadd.f32 %v617_v30, %v582_v26  ;;  %v551_v43 = vadd.f32 %v550_v52, %v3538_v36  ;;  %v590_v45 = vmul.f32 %v3538_v36, %v3538_v36  ;;  %v543_v42 = vadd.f32 %v542_v31, %v3532_v28  ;;  %v3546_v47 = vpop.f32.mrb[13].mxu0 }
  0xfb   :  { %v591_v49 = vmul.f32 %v3546_v47, %v3546_v47  ;;  %v3552_v51 = vpop.f32.mrb[12].mxu1  ;;  %v610_v54 = vadd.f32 %v609_v39, %v575_v27 }
  0xfc   :  { %v627_v57 = vadd.f32 %v626_v58, %v590_v45  ;;  %v552_v59 = vadd.f32 %v551_v43, %v3546_v47  ;;  %v3555_v52 = vpop.f32.mrb[13].mxu1  ;;  %v544_v61 = vadd.f32 %v543_v42, %v3535_v33  ;;  %v592_v0 = vmul.f32 %v3552_v51, %v3552_v51 }
  0xfd   :  { %v3558_v63 = vpop.f32.mrb[14].mxu0  ;;  %v619_v2 = vadd.f32 %v618_v41, %v583_v37  ;;  %v593_v20 = vmul.f32 %v3555_v52, %v3555_v52 }
  0xfe   :  { %5205 = vst [vmem:[#allocation14_spill] sm:$0xff] %v3558_v63  ;;  %v628_v6 = vadd.f32 %v627_v57, %v591_v49  ;;  %v561_v9 = vadd.f32 %v560_v4, %v3558_v63  ;;  %v599_v11 = vmul.f32 %v3558_v63, %v3558_v63  ;;  %v553_v58 = vadd.f32 %v552_v59, %v3552_v51  ;;  %v3566_v17 = vpop.f32.mrb[15].mxu0 }
  0xff   :  { %5206 = vst [vmem:[#allocation15_spill] sm:$0xff] %v3566_v17  ;;  %v600_v19 = vmul.f32 %v3566_v17, %v3566_v17  ;;  %v3572_v21 = vpop.f32.mrb[14].mxu1  ;;  %v620_v22 = vadd.f32 %v619_v2, %v584_v50 }
 0x100   :  { %5207 = vst [vmem:[#allocation16_spill] sm:$0xff] %v3572_v21  ;;  %v637_v26 = vadd.f32 %v636_v14, %v599_v11  ;;  %v562_v27 = vadd.f32 %v561_v9, %v3566_v17  ;;  %v601_v4 = vmul.f32 %v3572_v21, %v3572_v21  ;;  %v3577_v30 = vpop.f32.mrb[15].mxu1  ;;  %v554_v31 = vadd.f32 %v553_v58, %v3555_v52 }
 0x101   :  { %5208 = vst [vmem:[#allocation17_spill] sm:$0xff] %v3577_v30  ;;  %v3580_v37 = vpop.f32.mrb[16].mxu0  ;;  %v602_v39 = vmul.f32 %v3577_v30, %v3577_v30  ;;  %v629_v41 = vadd.f32 %v628_v6, %v592_v0 }
 0x102   :  { %v638_v43 = vadd.f32 %v637_v26, %v600_v19  ;;  %v563_v45 = vadd.f32 %v562_v27, %v3572_v21  ;;  %v3585_v42 = vpop.f32.mrb[17].mxu0  ;;  %v545_v14 = vadd.f32 %v3580_v37, %v544_v61  ;;  %v585_v49 = vmul.f32 %v3580_v37, %v3580_v37 }
 0x103   :  { %5209 = vst [vmem:[#allocation18_spill] sm:$0xff] %v3585_v42  ;;  %v535_v50 = vadd.f32 %v534_v34, %v3585_v42  ;;  %v576_v57 = vmul.f32 %v3585_v42, %v3585_v42  ;;  %v630_v59 = vadd.f32 %v629_v41, %v593_v20 }
 0x104   :  { %v564_v2 = vadd.f32 %v563_v45, %v3577_v30  ;;  %v621_v9 = vadd.f32 %v620_v22, %v585_v49  ;;  %v639_v0 = vadd.f32 %v638_v43, %v601_v4  ;;  %v2511_v43 = vld [vmem:[%s5104_s0 + $0x170] sm:$0xff]  ;;  %v2520_v45 = vld [vmem:[%s5104_s0 + $0x1b8] sm:$0xff] }
 0x105   :  { %536 = vadd.xlane.f32.xlu0 %v535_v50  ;;  %v3594_v6 = vpop.f32.mrb[18].mxu0  ;;  %v611_v11 = vadd.f32 %v610_v54, %v576_v57  ;;  %v3607_v54 = vld [vmem:[%s5106_s2] sm:$0xff]  ;;  %v2813_v57 = vpack.c.bf16 %v2520_v45, %v2511_v43 }
 0x106   :  { %5210 = vst [vmem:[#allocation19_spill] sm:$0xff] %v3594_v6  ;;  %v3596_v58 = vpop.f32.mrb[19].mxu0  ;;  %v565_v61 = vadd.f32 %v3594_v6, %v564_v2  ;;  %v603_v19 = vmul.f32 %v3594_v6, %v3594_v6  ;;  %v640_v34 = vadd.f32 %v639_v0, %v602_v39  ;;  %2693 = vmatprep.mubr.msk.f32.mxu1 %vm644_vm1, %v3607_v54  ;;  %v2519_v2 = vld [vmem:[%s5104_s0 + $0x1b0] sm:$0xff]  ;;  %v2538_v0 = vld [vmem:[%s5104_s0 + $0x248] sm:$0xff] }
 0x107   :  { %v555_v26 = vadd.f32 %v554_v31, %v3596_v58  ;;  %v594_v20 = vmul.f32 %v3596_v58, %v3596_v58  ;;  %2707 = vmatprep.mubr.msk.f32.mxu0 %vm644_vm1, %v3607_v54 }
 0x108   :  { %566 = vadd.xlane.f32.xlu1 %v565_v61  ;;  %v641_v22 = vadd.f32 %v640_v34, %v603_v19  ;;  %v3634_v19 = vld [vmem:[%s5106_s2 + $0x8] sm:$0xff] }
 0x109   :  { %546 = vadd.xlane.f32.xlu0 %v545_v14  ;;  %v631_v27 = vadd.f32 %v630_v59, %v594_v20  ;;  %v2510_v59 = vld [vmem:[%s5104_s0 + $0x168] sm:$0xff]  ;;  %v2537_v20 = vld [vmem:[%s5104_s0 + $0x240] sm:$0xff] }
 0x10a   :  { %v2815_v34 = vpack.c.bf16 %v2519_v2, %v2510_v59  ;;  %v2531_v59 = vld [vmem:[%s5104_s0 + $0x210] sm:$0xff]  ;;  %v2540_v2 = vld [vmem:[%s5104_s0 + $0x258] sm:$0xff] }
 0x10c   :  { %556 = vadd.xlane.f32.xlu1 %v555_v26  ;;  %v2528_v26 = vld [vmem:[%s5104_s0 + $0x1f8] sm:$0xff] }
 0x10d   :  { %612 = vadd.xlane.f32.xlu0 %v611_v11  ;;  %v2819_v45 = vpack.c.bf16 %v2537_v20, %v2528_v26  ;;  %v2530_v26 = vld [vmem:[%s5104_s0 + $0x208] sm:$0xff]  ;;  %v2539_v20 = vld [vmem:[%s5104_s0 + $0x250] sm:$0xff] }
 0x110   :  { %622 = vadd.xlane.f32.xlu1 %v621_v9  ;;  %v2529_v9 = vld [vmem:[%s5104_s0 + $0x200] sm:$0xff] }
 0x111   :  { %632 = vadd.xlane.f32.xlu0 %v631_v27  ;;  %v3645_v27 = vld [vmem:[%s5106_s2 + $0x10] sm:$0xff] }
 0x114   :  { %642 = vadd.xlane.f32.xlu1 %v641_v22  ;;  %v2817_v22 = vpack.c.bf16 %v2538_v0, %v2529_v9  ;;  %v2547_v9 = vld [vmem:[%s5104_s0 + $0x290] sm:$0xff] }
 0x115   :  { %v2515_v0 = vld [vmem:[%s5104_s0 + $0x190] sm:$0xff] }
 0x192   :  { %v537_v4 = vpop.xlane.xlu0 %536 }
 0x195   :  { %v567_v31 = vpop.xlane.xlu1 %566 }
 0x196   :  { %v547_v39 = vpop.xlane.xlu0 %546 }
 0x197   :  { %v2797_v41 = vpack.c.bf16 %v547_v39, %v537_v4  ;;  %v2513_v4 = vld [vmem:[%s5104_s0 + $0x180] sm:$0xff] }
 0x199   :  { %2798 = vmatprep.subr.bf16.mxu1 %v2797_v41  ;;  %v557_v14 = vpop.xlane.xlu1 %556 }
 0x19a   :  { %v2801_v49 = vpack.c.bf16 %v567_v31, %v557_v14  ;;  %2800 = vmatpush3.bf16.msra.mxu1 %v2797_v41  ;;  %v613_v50 = vpop.xlane.xlu0 %612  ;;  %v2522_v31 = vld [vmem:[%s5104_s0 + $0x1c8] sm:$0xff]  ;;  %v3660_v14 = vld [vmem:[%s5106_s2 + $0x18] sm:$0xff] }
 0x19c   :  { %2802 = vmatprep.subr.bf16.mxu1 %v2801_v49 }
 0x19d   :  { %v623_v11 = vpop.xlane.xlu1 %622 }
 0x19e   :  { %v2805_v61 = vpack.c.bf16 %v623_v11, %v613_v50  ;;  %2804 = vmatpush3.bf16.msra.mxu1 %v2801_v49  ;;  %v633_v39 = vpop.xlane.xlu0 %632  ;;  %v2821_v49 = vpack.c.bf16 %v2522_v31, %v2513_v4  ;;  %v2512_v50 = vld [vmem:[%s5104_s0 + $0x178] sm:$0xff]  ;;  %v2514_v31 = vld [vmem:[%s5104_s0 + $0x188] sm:$0xff] }
 0x19f   :  { %2814 = vmatprep.subr.bf16.mxu1 %v2813_v57  ;;  %v2521_v57 = vld [vmem:[%s5104_s0 + $0x1c0] sm:$0xff]  ;;  %v2524_v11 = vld [vmem:[%s5104_s0 + $0x1d8] sm:$0xff] }
 0x1a0   :  { %2806 = vmatprep.subr.bf16.mxu0 %v2805_v61  ;;  %v2829_v4 = vpack.c.bf16 %v2524_v11, %v2515_v0  ;;  %v2526_v0 = vld [vmem:[%s5104_s0 + $0x1e8] sm:$0xff]  ;;  %v2548_v11 = vld [vmem:[%s5104_s0 + $0x298] sm:$0xff] }
 0x1a1   :  { %2808 = vmatpush3.bf16.msra.mxu0 %v2805_v61  ;;  %v643_v41 = vpop.xlane.xlu1 %642  ;;  %2694 = vmatmul.mubr.msk.f32.vlgmr.msra.gmra.mrb[16].mxu1 %vm644_vm1, %v3634_v19  ;;  %v2823_v61 = vpack.c.bf16 %v2521_v57, %v2512_v50  ;;  %v2549_v50 = vld [vmem:[%s5104_s0 + $0x2a0] sm:$0xff] }
 0x1a2   :  { %v2809_v43 = vpack.c.bf16 %v643_v41, %v633_v39  ;;  %2816 = vmatpush1.bf16.msra.mxu1 %v2815_v34  ;;  %2696 = vmatprep.mubr.msk.f32.mxu1 %vm644_vm1, %v3645_v27  ;;  %v2825_v34 = vpack.c.bf16 %v2540_v2, %v2531_v59  ;;  %v2523_v39 = vld [vmem:[%s5104_s0 + $0x1d0] sm:$0xff]  ;;  %v2533_v41 = vld [vmem:[%s5104_s0 + $0x220] sm:$0xff]  ;;  %v2532_v59 = vld [vmem:[%s5104_s0 + $0x218] sm:$0xff] }
 0x1a3   :  { %2818 = vmatprep.subr.bf16.mxu1 %v2817_v22  ;;  %v2546_v22 = vld [vmem:[%s5104_s0 + $0x288] sm:$0xff]  ;;  %v2541_v2 = vld [vmem:[%s5104_s0 + $0x260] sm:$0xff] }
 0x1a4   :  { %2810 = vmatprep.subr.bf16.mxu0 %v2809_v43 }
 0x1a5   :  { %2812 = vmatpush3.bf16.msra.mxu0 %v2809_v43  ;;  %2697 = vmatmul.mubr.msk.f32.gmra.mrb[18].mxu1 %vm644_vm1, %v3660_v14  ;;  %v2542_v43 = vld [vmem:[%s5104_s0 + $0x268] sm:$0xff] }
 0x1a6   :  { %2820 = vmatpush1.bf16.msra.mxu1 %v2819_v45  ;;  %2822 = vmatprep.subr.bf16.mxu0 %v2821_v49  ;;  %v2827_v45 = vpack.c.bf16 %v2539_v20, %v2530_v26  ;;  %v2831_v49 = vpack.c.bf16 %v2523_v39, %v2514_v31  ;;  %v2833_v57 = vpack.c.bf16 %v2542_v43, %v2533_v41  ;;  %v2525_v26 = vld [vmem:[%s5104_s0 + $0x1e0] sm:$0xff]  ;;  %v2535_v31 = vld [vmem:[%s5104_s0 + $0x230] sm:$0xff]  ;;  %v2544_v39 = vld [vmem:[%s5104_s0 + $0x278] sm:$0xff] }
 0x1a7   :  { %1330 = vmatprep.subr.mxu1 %v2547_v9  ;;  %1386 = vmatprep.mubr.f32.mxu1 %v3185_v3  ;;  %v2517_v9 = vld [vmem:[%s5104_s0 + $0x1a0] sm:$0xff]  ;;  %v2534_v41 = vld [vmem:[%s5104_s0 + $0x228] sm:$0xff]  ;;  %v2543_v43 = vld [vmem:[%s5104_s0 + $0x270] sm:$0xff] }
 0x1a8   :  { %2708 = vmatmul.mubr.msk.f32.vlgmr.msra.gmra.mrb[20].mxu0 %vm644_vm1, %v3634_v19  ;;  %v2837_v20 = vpack.c.bf16 %v2526_v0, %v2517_v9  ;;  %v2536_v9 = vld [vmem:[%s5104_s0 + $0x238] sm:$0xff]  ;;  %v2545_v0 = vld [vmem:[%s5104_s0 + $0x280] sm:$0xff] }
 0x1a9   :  { %2824 = vmatpush1.bf16.msra.mxu0 %v2823_v61  ;;  %2710 = vmatprep.mubr.msk.f32.mxu0 %vm644_vm1, %v3645_v27  ;;  %v2835_v61 = vpack.c.bf16 %v2541_v2, %v2532_v59  ;;  %v2843_v59 = vpack.c.bf16 %v2543_v43, %v2534_v41 }
 0x1aa   :  { %1331 = vmatpush1.msra.mxu1 %v2546_v22  ;;  %2826 = vmatprep.subr.bf16.mxu0 %v2825_v34  ;;  %v2516_v34 = vld [vmem:[%s5104_s0 + $0x198] sm:$0xff]  ;;  %v2551_v22 = vld [vmem:[%s5104_s0 + $0x2b0] sm:$0xff] }
 0x1ab   :  { %2555 = vmatmul.mubr.msk.f32.vlgmr.msra.gmra.mrb[20].mxu1 %vm74_vm0, %v3293_v35  ;;  %2830 = vmatprep.subr.bf16.mxu1 %v2829_v4  ;;  %v2839_v4 = vpack.c.bf16 %v2525_v26, %v2516_v34  ;;  %v2552_v34 = vld [vmem:[%s5104_s0 + $0x2b8] sm:$0xff]  ;;  %v2554_v26 = vld [vmem:[%s5104_s0 + $0x2c8] sm:$0xff] }
 0x1ac   :  { %2711 = vmatmul.mubr.msk.f32.gmra.mrb[22].mxu0 %vm644_vm1, %v3660_v14  ;;  %1392 = vmatprep.mubr.f32.mxu1 %v3185_v3 }
 0x1ad   :  { %2828 = vmatpush1.bf16.msra.mxu0 %v2827_v45  ;;  %1475 = vmatprep.mubr.f32.mxu0 %v3185_v3  ;;  %v2518_v45 = vld [vmem:[%s5104_s0 + $0x1a8] sm:$0xff] }
 0x1ae   :  { %1419 = vmatprep.subr.mxu0 %v2549_v50  ;;  %2832 = vmatpush1.bf16.msra.mxu1 %v2831_v49  ;;  %v2527_v49 = vld [vmem:[%s5104_s0 + $0x1f0] sm:$0xff]  ;;  %v2550_v50 = vld [vmem:[%s5104_s0 + $0x2a8] sm:$0xff] }
 0x1af   :  { %2556 = vmatmul.mubr.msk.f32.gmra.mrb[22].mxu1 %vm74_vm0, %v3322_v46  ;;  %2834 = vmatprep.subr.bf16.mxu1 %v2833_v57  ;;  %v2841_v57 = vpack.c.bf16 %v2544_v39, %v2535_v31  ;;  %v2845_v2 = vpack.c.bf16 %v2527_v49, %v2518_v45 }
 0x1b0   :  { %1398 = vmatprep.mubr.f32.mxu1 %v3185_v3 }
 0x1b1   :  { %1420 = vmatpush1.msra.mxu0 %v2548_v11  ;;  %v2553_v11 = vld [vmem:[%s5104_s0 + $0x2c0] sm:$0xff] }
 0x1b2   :  { %2559 = vmatmul.mubr.msk.f32.vlgmr.msra.gmra.mrb[24].mxu0 %vm74_vm0, %v3293_v35  ;;  %2836 = vmatpush1.bf16.msra.mxu1 %v2835_v61  ;;  %v2849_v61 = vpack.c.bf16 %v2545_v0, %v2536_v9 }
 0x1b3   :  { %2557 = vmatmul.mubr.msk.f32.gmra.mrb[24].mxu1 %vm74_vm0, %v3348_v55  ;;  %1481 = vmatprep.mubr.f32.mxu0 %v3185_v3 }
 0x1b4   :  { %1404 = vmatprep.mubr.f32.mxu1 %v3185_v3  ;;  %2838 = vmatprep.subr.bf16.mxu0 %v2837_v20 }
 0x1b5   :  { %1508 = vmatprep.subr.mxu1 %v2551_v22  ;;  %2840 = vmatpush1.bf16.msra.mxu0 %v2839_v4 }
 0x1b6   :  { %2560 = vmatmul.mubr.msk.f32.gmra.mrb[26].mxu0 %vm74_vm0, %v3322_v46  ;;  %1509 = vmatpush1.msra.mxu1 %v2550_v50 }
 0x1b7   :  { %2558 = vmatmul.mubr.msk.f32.gmra.mrb[26].mxu1 %vm74_vm0, %v3371_v62  ;;  %1487 = vmatprep.mubr.f32.mxu0 %v3185_v3 }
 0x1b8   :  { %1564 = vmatprep.mubr.f32.mxu1 %v3185_v3  ;;  %2842 = vmatprep.subr.bf16.mxu0 %v2841_v57 }
 0x1b9   :  { %2844 = vmatpush1.bf16.msra.mxu0 %v2843_v59  ;;  %2846 = vmatprep.subr.bf16.mxu1 %v2845_v2 }
 0x1ba   :  { %2561 = vmatmul.mubr.msk.f32.gmra.mrb[28].mxu0 %vm74_vm0, %v3348_v55  ;;  %1597 = vmatprep.subr.mxu0 %v2553_v11 }
 0x1bb   :  { %2563 = vmatmul.mubr.msk.f32.vlgmr.msra.gmra.mrb[28].mxu1 %vm74_vm0, %v3293_v35  ;;  %1493 = vmatprep.mubr.f32.mxu0 %v3185_v3 }
 0x1bc   :  { %1570 = vmatprep.mubr.f32.mxu1 %v3185_v3  ;;  %2848 = vmatpush3.bf16.msra.mxu1 %v2845_v2 }
 0x1bd   :  { %1598 = vmatpush1.msra.mxu0 %v2552_v34  ;;  %2850 = vmatprep.subr.bf16.mxu1 %v2849_v61 }
 0x1be   :  { %2562 = vmatmul.mubr.msk.f32.gmra.mrb[30].mxu0 %vm74_vm0, %v3371_v62 }
 0x1bf   :  { %2564 = vmatmul.mubr.msk.f32.gmra.mrb[30].mxu1 %vm74_vm0, %v3322_v46  ;;  %1653 = vmatprep.mubr.f32.mxu0 %v3185_v3 }
 0x1c0   :  { %1576 = vmatprep.mubr.f32.mxu1 %v3185_v3  ;;  %2852 = vmatpush3.bf16.msra.mxu1 %v2849_v61 }
 0x1c1   :  { %2721 = vmatprep.subr.mxu1 %v2554_v26 }
 0x1c2   :  { %2567 = vmatmul.mubr.msk.f32.vlgmr.msra.gmra.mrb[32].mxu0 %vm74_vm0, %v3293_v35 }
 0x1c3   :  { %2565 = vmatmul.mubr.msk.f32.gmra.mrb[32].mxu1 %vm74_vm0, %v3348_v55  ;;  %1659 = vmatprep.mubr.f32.mxu0 %v3185_v3 }
 0x1c4   :  { %1582 = vmatprep.mubr.f32.mxu1 %v3185_v3  ;;  %2722 = vmatpush3.msra.mxu1 %v2554_v26 }
 0x1c6   :  { %2568 = vmatmul.mubr.msk.f32.gmra.mrb[34].mxu0 %vm74_vm0, %v3322_v46 }
 0x1c7   :  { %2566 = vmatmul.mubr.msk.f32.gmra.mrb[34].mxu1 %vm74_vm0, %v3371_v62  ;;  %1665 = vmatprep.mubr.f32.mxu0 %v3185_v3 }
 0x1c8   :  { %2723 = vmatprep.mubr.msk.f32.mxu1 %vm74_vm0, %v3293_v35  ;;  %v5109_v35 = vmov 0  }
 0x1c9   :  { %2873 = vset.pattern.permute.xlu1 %v5109_v35  ;;  %2872 = vset.pattern.permute.xlu0 %v5109_v35 }
 0x1ca   :  { %2569 = vmatmul.mubr.msk.f32.gmra.mrb[36].mxu0 %vm74_vm0, %v3348_v55 }
 0x1cb   :  { %2724 = vmatmul.mubr.msk.f32.vlgmr.msra.gmra.mrb[36].mxu1 %vm74_vm0, %v3322_v46  ;;  %1671 = vmatprep.mubr.f32.mxu0 %v3185_v3 }
 0x1cc   :  { %2726 = vmatprep.mubr.msk.f32.mxu1 %vm74_vm0, %v3348_v55 }
 0x1ce   :  { %2570 = vmatmul.mubr.msk.f32.gmra.mrb[38].mxu0 %vm74_vm0, %v3371_v62 }
 0x1cf   :  { %2727 = vmatmul.mubr.msk.f32.gmra.mrb[38].mxu1 %vm74_vm0, %v3371_v62  ;;  %2737 = vmatprep.mubr.msk.f32.mxu0 %vm644_vm1, %v3607_v54 }
 0x1d0   :  { %2751 = vmatprep.mubr.msk.f32.mxu1 %vm644_vm1, %v3607_v54 }
 0x274   :  { %v2695_v3 = vpop.f32.mrb[16].mxu1 }
 0x275   :  { %v723_v46 = vpop.f32.mrb[17].mxu1  ;;  %v3837_v55 = vmul.f32 0.00022956841, %v2695_v3 }
 0x276   :  { %v3839_v22 = vmul.f32 0.00022956841, %v723_v46 }
 0x277   :  { %v3843_v31 = vmul.f32 %v3837_v55, %v3837_v55 }
 0x278   :  { %v2698_v20 = vpop.f32.mrb[18].mxu1  ;;  %v3851_v43 = vmul.f32 %v3839_v22, %v3839_v22 }
 0x279   :  { %v733_v4 = vpop.f32.mrb[19].mxu1  ;;  %v3847_v41 = vmul.f32 0.00022956841, %v2698_v20 }
 0x27a   :  { %v3855_v49 = vmul.f32 0.00022956841, %v733_v4 }
 0x27b   :  { %v2709_v62 = vpop.f32.mrb[20].mxu0  ;;  %v3869_v11 = vmul.f32 %v3847_v41, %v3847_v41 }
 0x27c   :  { %v3845_v39 = vmul.f32 0.00022956841, %v2709_v62  ;;  %v813_v54 = vpop.f32.mrb[21].mxu0  ;;  %v3879_v46 = vmul.f32 %v3855_v49, %v3855_v49 }
 0x27d   :  { %v3853_v45 = vmul.f32 0.00022956841, %v813_v54 }
 0x27e   :  { %v3859_v57 = vpop.f32.mrb[20].mxu1 }
 0x27f   :  { %5211 = vst [vmem:[#allocation20_spill] sm:$0xff] %v3859_v57  ;;  %v2712_v2 = vpop.f32.mrb[22].mxu0  ;;  %v1803_v9 = vmul.f32 %v3859_v57, %v3859_v57  ;;  %v3865_v0 = vpop.f32.mrb[21].mxu1 }
 0x280   :  { %5212 = vst [vmem:[#allocation21_spill] sm:$0xff] %v3865_v0  ;;  %v3871_v61 = vmul.f32 0.00022956841, %v2712_v2  ;;  %v823_v34 = vpop.f32.mrb[23].mxu0  ;;  %v1763_v26 = vadd.f32 %v3865_v0, %v3859_v57  ;;  %v1804_v3 = vmul.f32 %v3865_v0, %v3865_v0 }
 0x281   :  { %v3881_v20 = vmul.f32 0.00022956841, %v823_v34 }
 0x282   :  { %v1839_v62 = vadd.f32 %v1804_v3, %v1803_v9  ;;  %v3885_v54 = vpop.f32.mrb[22].mxu1 }
 0x283   :  { %5213 = vst [vmem:[#allocation22_spill] sm:$0xff] %v3885_v54  ;;  %v1812_v35 = vmul.f32 %v3885_v54, %v3885_v54  ;;  %v3891_v59 = vpop.f32.mrb[23].mxu1 }
 0x284   :  { %5214 = vst [vmem:[#allocation23_spill] sm:$0xff] %v3891_v59  ;;  %v1773_v50 = vadd.f32 %v3891_v59, %v3885_v54  ;;  %v1813_v34 = vmul.f32 %v3891_v59, %v3891_v59 }
 0x285   :  { %v3897_v0 = vpop.f32.mrb[24].mxu0 }
 0x286   :  { %5215 = vst [vmem:[#allocation24_spill] sm:$0xff] %v3897_v0  ;;  %v1764_v9 = vadd.f32 %v1763_v26, %v3897_v0  ;;  %v1805_v3 = vmul.f32 %v3897_v0, %v3897_v0  ;;  %v1849_v4 = vadd.f32 %v1813_v34, %v1812_v35  ;;  %v3902_v2 = vpop.f32.mrb[25].mxu0  ;;  %v3904_v57 = vpop.f32.mrb[24].mxu1 }
 0x287   :  { %5216 = vst [vmem:[#allocation25_spill] sm:$0xff] %v3902_v2  ;;  %5217 = vst [vmem:[#allocation26_spill] sm:$0xff] %v3904_v57  ;;  %v1806_v42 = vmul.f32 %v3902_v2, %v3902_v2  ;;  %v1821_v54 = vmul.f32 %v3904_v57, %v3904_v57  ;;  %v3910_v13 = vpop.f32.mrb[25].mxu1 }
 0x288   :  { %5218 = vst [vmem:[#allocation27_spill] sm:$0xff] %v3910_v13  ;;  %v1840_v59 = vadd.f32 %v1839_v62, %v1805_v3  ;;  %v1765_v8 = vadd.f32 %v1764_v9, %v3902_v2  ;;  %v1783_v26 = vadd.f32 %v3910_v13, %v3904_v57  ;;  %v1822_v35 = vmul.f32 %v3910_v13, %v3910_v13 }
 0x289   :  { %v3917_v34 = vpop.f32.mrb[26].mxu0 }
 0x28a   :  { %5219 = vst [vmem:[#allocation28_spill] sm:$0xff] %v3917_v34  ;;  %v1841_v0 = vadd.f32 %v1840_v59, %v1806_v42  ;;  %v1774_v1 = vadd.f32 %v1773_v50, %v3917_v34  ;;  %v1814_v60 = vmul.f32 %v3917_v34, %v3917_v34  ;;  %v1859_v12 = vadd.f32 %v1822_v35, %v1821_v54  ;;  %v3922_v10 = vpop.f32.mrb[27].mxu0  ;;  %v3924_v62 = vpop.f32.mrb[26].mxu1 }
 0x28b   :  { %5220 = vst [vmem:[#allocation29_spill] sm:$0xff] %v3922_v10  ;;  %5221 = vst [vmem:[#allocation30_spill] sm:$0xff] %v3924_v62  ;;  %v1815_v9 = vmul.f32 %v3922_v10, %v3922_v10  ;;  %v1830_v3 = vmul.f32 %v3924_v62, %v3924_v62  ;;  %v3930_v2 = vpop.f32.mrb[27].mxu1 }
 0x28c   :  { %5222 = vst [vmem:[#allocation31_spill] sm:$0xff] %v3930_v2  ;;  %v1850_v13 = vadd.f32 %v1849_v4, %v1814_v60  ;;  %v1775_v42 = vadd.f32 %v1774_v1, %v3922_v10  ;;  %v1793_v50 = vadd.f32 %v3930_v2, %v3924_v62  ;;  %v1831_v59 = vmul.f32 %v3930_v2, %v3930_v2 }
 0x28d   :  { %v3937_v54 = vpop.f32.mrb[28].mxu0  ;;  %v5287_v44 = vld [vmem:[#allocation24_spill] sm:$0xff] }
 0x28e   :  { %5223 = vst [vmem:[#allocation32_spill] sm:$0xff] %v3937_v54  ;;  %v1851_v35 = vadd.f32 %v1850_v13, %v1815_v9  ;;  %v1869_v57 = vadd.f32 %v1831_v59, %v1830_v3  ;;  %v1784_v34 = vadd.f32 %v1783_v26, %v3937_v54  ;;  %v1823_v7 = vmul.f32 %v3937_v54, %v3937_v54  ;;  %v3942_v5 = vpop.f32.mrb[28].mxu1  ;;  %v3944_v60 = vpop.f32.mrb[29].mxu0 }
 0x28f   :  { %5224 = vst [vmem:[#allocation33_spill] sm:$0xff] %v3942_v5  ;;  %5225 = vst [vmem:[#allocation34_spill] sm:$0xff] %v3944_v60  ;;  %v1766_v1 = vadd.f32 %v1765_v8, %v3942_v5  ;;  %v1807_v4 = vmul.f32 %v3942_v5, %v3942_v5  ;;  %v1824_v2 = vmul.f32 %v3944_v60, %v3944_v60  ;;  %v3951_v62 = vpop.f32.mrb[29].mxu1 }
 0x290   :  { %5226 = vst [vmem:[#allocation35_spill] sm:$0xff] %v3951_v62  ;;  %v1860_v13 = vadd.f32 %v1859_v12, %v1823_v7  ;;  %v1785_v26 = vadd.f32 %v1784_v34, %v3944_v60  ;;  %v1808_v9 = vmul.f32 %v3951_v62, %v3951_v62 }
 0x291   :  { %v1842_v3 = vadd.f32 %v1841_v0, %v1807_v4  ;;  %v1767_v59 = vadd.f32 %v1766_v1, %v3951_v62  ;;  %v3957_v54 = vpop.f32.mrb[30].mxu0 }
 0x292   :  { %5227 = vst [vmem:[#allocation36_spill] sm:$0xff] %v3957_v54  ;;  %v1861_v8 = vadd.f32 %v1860_v13, %v1824_v2  ;;  %v1794_v10 = vadd.f32 %v1793_v50, %v3957_v54  ;;  %v1832_v5 = vmul.f32 %v3957_v54, %v3957_v54  ;;  %v3962_v6 = vpop.f32.mrb[30].mxu1  ;;  %v3964_v30 = vpop.f32.mrb[31].mxu0 }
 0x293   :  { %5228 = vst [vmem:[#allocation37_spill] sm:$0xff] %v3962_v6  ;;  %5229 = vst [vmem:[#allocation38_spill] sm:$0xff] %v3964_v30  ;;  %v1843_v7 = vadd.f32 %v1842_v3, %v1808_v9  ;;  %v1776_v12 = vadd.f32 %v1775_v42, %v3962_v6  ;;  %v1816_v0 = vmul.f32 %v3962_v6, %v3962_v6  ;;  %v3971_v1 = vpop.f32.mrb[31].mxu1 }
 0x294   :  { %v1833_v34 = vmul.f32 %v3964_v30, %v3964_v30  ;;  %5230 = vst [vmem:[#allocation39_spill] sm:$0xff] %v3971_v1  ;;  %v1870_v2 = vadd.f32 %v1869_v57, %v1832_v5  ;;  %v1795_v50 = vadd.f32 %v1794_v10, %v3964_v30  ;;  %v1817_v4 = vmul.f32 %v3971_v1, %v3971_v1 }
 0x295   :  { %v1852_v13 = vadd.f32 %v1851_v35, %v1816_v0  ;;  %v1777_v62 = vadd.f32 %v1776_v12, %v3971_v1  ;;  %v3977_v9 = vpop.f32.mrb[32].mxu0 }
 0x296   :  { %5231 = vst [vmem:[#allocation40_spill] sm:$0xff] %v3977_v9  ;;  %v1871_v42 = vadd.f32 %v1870_v2, %v1833_v34  ;;  %v1768_v3 = vadd.f32 %v1767_v59, %v3977_v9  ;;  %v1809_v60 = vmul.f32 %v3977_v9, %v3977_v9  ;;  %v3982_v54 = vpop.f32.mrb[32].mxu1  ;;  %v3984_v6 = vpop.f32.mrb[33].mxu0 }
 0x297   :  { %5232 = vst [vmem:[#allocation41_spill] sm:$0xff] %v3982_v54  ;;  %5233 = vst [vmem:[#allocation42_spill] sm:$0xff] %v3984_v6  ;;  %v1853_v5 = vadd.f32 %v1852_v13, %v1817_v4  ;;  %v1786_v10 = vadd.f32 %v1785_v26, %v3982_v54  ;;  %v1825_v57 = vmul.f32 %v3982_v54, %v3982_v54  ;;  %v3991_v12 = vpop.f32.mrb[33].mxu1 }
 0x298   :  { %v1810_v35 = vmul.f32 %v3984_v6, %v3984_v6  ;;  %5234 = vst [vmem:[#allocation43_spill] sm:$0xff] %v3991_v12  ;;  %v1826_v59 = vmul.f32 %v3991_v12, %v3991_v12  ;;  %v1769_v0 = vadd.f32 %v1768_v3, %v3984_v6  ;;  %v1844_v34 = vadd.f32 %v1843_v7, %v1809_v60 }
 0x299   :  { %v1862_v2 = vadd.f32 %v1861_v8, %v1825_v57  ;;  %v1787_v9 = vadd.f32 %v1786_v10, %v3991_v12  ;;  %v3997_v4 = vpop.f32.mrb[34].mxu0 }
 0x29a   :  { %5235 = vst [vmem:[#allocation44_spill] sm:$0xff] %v3997_v4  ;;  %v1778_v26 = vadd.f32 %v1777_v62, %v3997_v4  ;;  %v1818_v13 = vmul.f32 %v3997_v4, %v3997_v4  ;;  %v4002_v54 = vpop.f32.mrb[34].mxu1  ;;  %v4004_v30 = vpop.f32.mrb[35].mxu0  ;;  %v1845_v1 = vadd.f32 %v1844_v34, %v1810_v35 }
 0x29b   :  { %5236 = vst [vmem:[#allocation45_spill] sm:$0xff] %v4002_v54  ;;  %5237 = vst [vmem:[#allocation46_spill] sm:$0xff] %v4004_v30  ;;  %v1863_v21 = vadd.f32 %v1862_v2, %v1826_v59  ;;  %v1796_v17 = vadd.f32 %v1795_v50, %v4002_v54  ;;  %v1834_v60 = vmul.f32 %v4002_v54, %v4002_v54  ;;  %v4011_v7 = vpop.f32.mrb[35].mxu1 }
 0x29c   :  { %v1819_v8 = vmul.f32 %v4004_v30, %v4004_v30  ;;  %5238 = vst [vmem:[#allocation47_spill] sm:$0xff] %v4011_v7  ;;  %v1835_v62 = vmul.f32 %v4011_v7, %v4011_v7  ;;  %v1779_v3 = vadd.f32 %v1778_v26, %v4004_v30  ;;  %v1854_v10 = vadd.f32 %v1853_v5, %v1818_v13 }
 0x29d   :  { %v1872_v57 = vadd.f32 %v1871_v42, %v1834_v60  ;;  %v1797_v35 = vadd.f32 %v1796_v17, %v4011_v7  ;;  %v4017_v59 = vpop.f32.mrb[36].mxu0 }
 0x29e   :  { %5239 = vst [vmem:[#allocation48_spill] sm:$0xff] %v4017_v59  ;;  %v1788_v50 = vadd.f32 %v1787_v9, %v4017_v59  ;;  %v1827_v34 = vmul.f32 %v4017_v59, %v4017_v59  ;;  %v4022_v2 = vpop.f32.mrb[36].mxu1  ;;  %v4024_v6 = vpop.f32.mrb[37].mxu0  ;;  %v1855_v12 = vadd.f32 %v1854_v10, %v1819_v8 }
 0x29f   :  { %5240 = vst [vmem:[#allocation49_spill] sm:$0xff] %v4022_v2  ;;  %5241 = vst [vmem:[#allocation50_spill] sm:$0xff] %v4024_v6  ;;  %v1873_v54 = vadd.f32 %v1872_v57, %v1835_v62  ;;  %v1828_v26 = vmul.f32 %v4024_v6, %v4024_v6  ;;  %v4028_v5 = vpop.f32.mrb[37].mxu1  ;;  %v1780_v17 = vadd.f32 %v4022_v2, %v1779_v3 }
 0x2a0   :  { %v1820_v42 = vmul.f32 %v4022_v2, %v4022_v2  ;;  %v1770_v9 = vadd.f32 %v1769_v0, %v4028_v5  ;;  %v1811_v13 = vmul.f32 %v4028_v5, %v4028_v5  ;;  %v1789_v60 = vadd.f32 %v1788_v50, %v4024_v6 }
 0x2a1   :  { %v1864_v59 = vadd.f32 %v1863_v21, %v1827_v34  ;;  %1781 = vadd.xlane.f32.xlu1 %v1780_v17  ;;  %v4037_v8 = vpop.f32.mrb[38].mxu0 }
 0x2a2   :  { %v1856_v62 = vadd.f32 %v1855_v12, %v1820_v42  ;;  %v1798_v10 = vadd.f32 %v1797_v35, %v4037_v8  ;;  %v1836_v3 = vmul.f32 %v4037_v8, %v4037_v8  ;;  %v4042_v57 = vpop.f32.mrb[38].mxu1  ;;  %1771 = vadd.xlane.f32.xlu0 %v1770_v9  ;;  %v4044_v7 = vpop.f32.mrb[39].mxu0  ;;  %v1846_v0 = vadd.f32 %v1845_v1, %v1811_v13 }
 0x2a3   :  { %v1865_v2 = vadd.f32 %v1864_v59, %v1828_v26  ;;  %v1837_v50 = vmul.f32 %v4044_v7, %v4044_v7  ;;  %v4048_v21 = vpop.f32.mrb[39].mxu1  ;;  %v1838_v12 = vmul.f32 %v4042_v57, %v4042_v57  ;;  %v5243_v13 = vsub.f32 %v3845_v39, %v3843_v31  ;;  %v4074_v39 = vld [vmem:[%s5107_s3 + $0x8] sm:$0xff] }
 0x2a4   :  { %5242 = vst [vmem:[#allocation51_spill] sm:$0xff] %v4048_v21  ;;  %v1799_v35 = vadd.f32 %v1798_v10, %v4044_v7  ;;  %v1790_v34 = vadd.f32 %v1789_v60, %v4048_v21  ;;  %v1874_v17 = vadd.f32 %v1873_v54, %v1836_v3  ;;  %v1829_v42 = vmul.f32 %v4048_v21, %v4048_v21 }
 0x2a5   :  { %1857 = vadd.xlane.f32.xlu1 %v1856_v62  ;;  %v845_v10 = vadd.f32 1e-05, %v5243_v13  ;;  %v5244_v54 = vsub.f32 %v3853_v45, %v3851_v43  ;;  %v5245_v62 = vsub.f32 %v3871_v61, %v3869_v11  ;;  %v4080_v45 = vld [vmem:[%s5107_s3] sm:$0xff] }
 0x2a6   :  { %1847 = vadd.xlane.f32.xlu0 %v1846_v0  ;;  %v1800_v1 = vadd.f32 %v4042_v57, %v1799_v35  ;;  %v1875_v59 = vadd.f32 %v1874_v17, %v1837_v50  ;;  %v1866_v26 = vadd.f32 %v1865_v2, %v1829_v42  ;;  %v5246_v2 = vsub.f32 %v3881_v20, %v3879_v46  ;;  %v4093_v46 = vld [vmem:[%s5107_s3 + $0x10] sm:$0xff] }
 0x2a7   :  { %v844_v60 = vadd.f32 1e-05, %v5244_v54  ;;  %2881 = vrsqrt.f32 %v845_v10  ;;  %v847_v3 = vadd.f32 1e-05, %v5245_v62  ;;  %v5175_v50 = vmov 1  }
 0x2a8   :  { %v1876_v9 = vadd.f32 %v1875_v59, %v1838_v12  ;;  %v846_v0 = vadd.f32 1e-05, %v5246_v2  ;;  %v5247_v12 = vmov 0   ;;  %v5261_v2 = vld [vmem:[#allocation18_spill] sm:$0xff] }
 0x2a9   :  { %1801 = vadd.xlane.f32.xlu1 %v1800_v1  ;;  %2883 = vrsqrt.f32 %v844_v60 }
 0x2aa   :  { %1791 = vadd.xlane.f32.xlu0 %v1790_v34  ;;  %2885 = vrsqrt.f32 %v847_v3 }
 0x2ab   :  { %2887 = vrsqrt.f32 %v846_v0  ;;  %v5260_v0 = vld [vmem:[#allocation13_spill] sm:$0xff] }
 0x2ad   :  { %1877 = vadd.xlane.f32.xlu1 %v1876_v9 }
 0x2ae   :  { %1867 = vadd.xlane.f32.xlu0 %v1866_v26 }
 0x2b1   :  { %v2882_v31 = vpop.eup %2881 }
 0x2b3   :  { %v2884_v43 = vpop.eup %2883 }
 0x2b4   :  { %v2886_v11 = vpop.eup %2885  ;;  %v908_v61 = vmul.f32 %v2884_v43, %v4080_v45 }
 0x2be   :  { %859 = vperm.xlu1 %2873, %v3837_v55   ;;  %v909_v55 = vmul.f32 %v2882_v31, %v4074_v39 }
 0x2c2   :  { %864 = vperm.xlu1 %2873, %v3855_v49   ;;  %v4087_v49 = vld [vmem:[%s5107_s3 + $0x18] sm:$0xff] }
 0x2c4   :  { %854 = vperm.xlu0 %2872, %v3839_v22   ;;  %v2888_v22 = vpop.eup %2887 }
 0x2c5   :  { %v910_v20 = vmul.f32 %v2888_v22, %v4093_v46  ;;  %v5256_v22 = vld [vmem:[#allocation5_spill] sm:$0xff] }
 0x2c6   :  { %869 = vperm.xlu1 %2873, %v3847_v41   ;;  %v911_v41 = vmul.f32 %v2886_v11, %v4087_v49 }
 0x2c8   :  { %919 = vperm.xlu0 %2872, %v909_v55   ;;  %v5258_v55 = vld [vmem:[#allocation11_spill] sm:$0xff] }
 0x2ca   :  { %914 = vperm.xlu1 %2873, %v908_v61  }
 0x2cc   :  { %929 = vperm.xlu0 %2872, %v911_v41  }
 0x2ce   :  { %924 = vperm.xlu1 %2873, %v910_v20  }
 0x2d2   :  { %2874 = vset.pattern.permute.xlu1 %v5175_v50 }
 0x2d3   :  { %970 = vperm.xlu1 %2874, %v4080_v45  }
 0x2d7   :  { %2875 = vset.pattern.permute.xlu1 %v5247_v12 }
 0x32e   :  { %v1782_v35 = vpop.xlane.xlu1 %1781 }
 0x32f   :  { %v1772_v34 = vpop.xlane.xlu0 %1771 }
 0x330   :  { %v2853_v17 = vpack.c.bf16 %v1782_v35, %v1772_v34 }
 0x332   :  { %2854 = vmatprep.subr.bf16.mxu0 %v2853_v17  ;;  %v1858_v42 = vpop.xlane.xlu1 %1857 }
 0x333   :  { %v1848_v1 = vpop.xlane.xlu0 %1847  ;;  %2856 = vmatpush3.bf16.msra.mxu0 %v2853_v17 }
 0x334   :  { %v2861_v59 = vpack.c.bf16 %v1858_v42, %v1848_v1 }
 0x336   :  { %2862 = vmatprep.subr.bf16.mxu1 %v2861_v59  ;;  %v1802_v26 = vpop.xlane.xlu1 %1801 }
 0x337   :  { %2864 = vmatpush3.bf16.msra.mxu1 %v2861_v59  ;;  %v1792_v9 = vpop.xlane.xlu0 %1791 }
 0x338   :  { %v2857_v13 = vpack.c.bf16 %v1802_v26, %v1792_v9 }
 0x33a   :  { %2858 = vmatprep.subr.bf16.mxu0 %v2857_v13  ;;  %v1878_v10 = vpop.xlane.xlu1 %1877 }
 0x33b   :  { %v1868_v54 = vpop.xlane.xlu0 %1867  ;;  %2860 = vmatpush3.bf16.msra.mxu0 %v2857_v13 }
 0x33c   :  { %v2865_v60 = vpack.c.bf16 %v1878_v10, %v1868_v54 }
 0x33e   :  { %2738 = vmatmul.mubr.msk.f32.vlgmr.msra.gmra.mrb[40].mxu0 %vm644_vm1, %v3634_v19  ;;  %2866 = vmatprep.subr.bf16.mxu1 %v2865_v60  ;;  %v4102_v62 = vpop.permute.xlu1 %859 }
 0x33f   :  { %2868 = vmatpush3.bf16.msra.mxu1 %v2865_v60  ;;  %2740 = vmatprep.mubr.msk.f32.mxu0 %vm644_vm1, %v3645_v27 }
 0x342   :  { %2752 = vmatmul.mubr.msk.f32.vlgmr.msra.gmra.mrb[40].mxu1 %vm644_vm1, %v3634_v19  ;;  %v865_v41 = vpop.permute.xlu1 %864  ;;  %2741 = vmatmul.mubr.msk.f32.gmra.mrb[42].mxu0 %vm644_vm1, %v3660_v14 }
 0x343   :  { %v890_v20 = vsub.f32 %v3461_v29, %v865_v41  ;;  %v891_v35 = vsub.f32 %v3467_v32, %v865_v41  ;;  %v892_v34 = vsub.f32 %v3474_v38, %v865_v41  ;;  %v893_v17 = vsub.f32 %v3478_v40, %v865_v41  ;;  %2754 = vmatprep.mubr.msk.f32.mxu1 %vm644_vm1, %v3645_v27  ;;  %v5255_v32 = vld [vmem:[#allocation4_spill] sm:$0xff] }
 0x344   :  { %v894_v42 = vsub.f32 %v3538_v36, %v865_v41  ;;  %v895_v1 = vsub.f32 %v3546_v47, %v865_v41  ;;  %v896_v19 = vsub.f32 %v3552_v51, %v865_v41  ;;  %v897_v59 = vsub.f32 %v3555_v52, %v865_v41  ;;  %v5254_v36 = vld [vmem:[#allocation3_spill] sm:$0xff]  ;;  %v5257_v52 = vld [vmem:[#allocation10_spill] sm:$0xff] }
 0x345   :  { %v898_v26 = vsub.f32 %v3596_v58, %v865_v41  ;;  %v855_v58 = vpop.permute.xlu0 %854  ;;  %v5253_v41 = vld [vmem:[#allocation2_spill] sm:$0xff] }
 0x346   :  { %2755 = vmatmul.mubr.msk.f32.gmra.mrb[42].mxu1 %vm644_vm1, %v3660_v14  ;;  %v4141_v29 = vpop.permute.xlu1 %869  ;;  %v872_v40 = vsub.f32 %v5253_v41, %v855_v58  ;;  %v873_v38 = vsub.f32 %v5254_v36, %v855_v58  ;;  %v874_v47 = vsub.f32 %v5255_v32, %v855_v58  ;;  %v875_v61 = vsub.f32 %v5256_v22, %v855_v58  ;;  %v5259_v14 = vld [vmem:[#allocation12_spill] sm:$0xff] }
 0x347   :  { %5248 = vst [vmem:[#allocation52_spill] sm:$0xff] %v4141_v29  ;;  %v876_v11 = vsub.f32 %v5257_v52, %v855_v58  ;;  %v877_v43 = vsub.f32 %v5258_v55, %v855_v58  ;;  %v878_v31 = vsub.f32 %v5259_v14, %v855_v58  ;;  %v879_v13 = vsub.f32 %v5260_v0, %v855_v58 }
 0x348   :  { %v880_v3 = vsub.f32 %v5261_v2, %v855_v58 }
 0x34a   :  { %v915_v60 = vpop.permute.xlu1 %914 }
 0x34b   :  { %v932_v54 = vmul.f32 %v915_v60, %v872_v40  ;;  %v933_v50 = vmul.f32 %v915_v60, %v873_v38  ;;  %v934_v41 = vmul.f32 %v915_v60, %v874_v47  ;;  %v935_v9 = vmul.f32 %v915_v60, %v875_v61 }
 0x34c   :  { %v936_v36 = vmul.f32 %v915_v60, %v876_v11  ;;  %v937_v27 = vmul.f32 %v915_v60, %v877_v43  ;;  %v938_v32 = vmul.f32 %v915_v60, %v878_v31  ;;  %v939_v51 = vmul.f32 %v915_v60, %v879_v13 }
 0x34d   :  { %v940_v38 = vmul.f32 %v915_v60, %v880_v3 }
 0x34e   :  { %v925_v10 = vpop.permute.xlu1 %924 }
 0x34f   :  { %v4170_v22 = vmul.f32 %v925_v10, %v890_v20  ;;  %v4172_v52 = vmul.f32 %v925_v10, %v891_v35  ;;  %v4174_v55 = vmul.f32 %v925_v10, %v892_v34  ;;  %v4176_v14 = vmul.f32 %v925_v10, %v893_v17 }
 0x350   :  { %v4178_v0 = vmul.f32 %v925_v10, %v894_v42  ;;  %v4180_v2 = vmul.f32 %v925_v10, %v895_v1  ;;  %v4182_v40 = vmul.f32 %v925_v10, %v896_v19  ;;  %v4184_v61 = vmul.f32 %v925_v10, %v897_v59 }
 0x351   :  { %v4186_v43 = vmul.f32 %v925_v10, %v898_v26 }
 0x352   :  { %v4188_v31 = vpop.permute.xlu1 %970 }
 0x353   :  { %v4191_v11 = vadd.f32 %v4188_v31, %v932_v54  ;;  %v4194_v20 = vadd.f32 %v4188_v31, %v933_v50  ;;  %v4197_v35 = vadd.f32 %v4188_v31, %v934_v41  ;;  %v4200_v34 = vadd.f32 %v4188_v31, %v935_v9 }
 0x354   :  { %v4203_v3 = vadd.f32 %v4188_v31, %v936_v36  ;;  %v4206_v17 = vadd.f32 %v4188_v31, %v937_v27  ;;  %v4209_v42 = vadd.f32 %v4188_v31, %v938_v32  ;;  %v4212_v1 = vadd.f32 %v4188_v31, %v939_v51 }
 0x355   :  { %v4215_v50 = vadd.f32 %v4188_v31, %v940_v38  ;;  %v1024_v19 = vsub.f32 0.0, %v4191_v11  ;;  %v1025_v59 = vsub.f32 0.0, %v4194_v20  ;;  %v1026_v26 = vsub.f32 0.0, %v4197_v35 }
 0x356   :  { %v1027_v47 = vsub.f32 0.0, %v4200_v34  ;;  %v1028_v58 = vsub.f32 0.0, %v4203_v3  ;;  %v1029_v27 = vsub.f32 0.0, %v4206_v17  ;;  %v1030_v9 = vsub.f32 0.0, %v4209_v42 }
 0x357   :  { %v1060_v13 = vmul.f32 1.442695, %v1024_v19  ;;  %v1062_v51 = vmul.f32 1.442695, %v1025_v59  ;;  %v1031_v10 = vsub.f32 0.0, %v4212_v1  ;;  %v1032_v41 = vsub.f32 0.0, %v4215_v50 }
 0x358   :  { %v1064_v54 = vmul.f32 1.442695, %v1026_v26  ;;  %v1066_v60 = vmul.f32 1.442695, %v1027_v47  ;;  %v1068_v36 = vmul.f32 1.442695, %v1028_v58 }
 0x359   :  { %2889 = vpow2.f32 %v1060_v13  ;;  %v1070_v32 = vmul.f32 1.442695, %v1029_v27  ;;  %v1072_v38 = vmul.f32 1.442695, %v1030_v9  ;;  %v1074_v63 = vmul.f32 1.442695, %v1031_v10 }
 0x35a   :  { %2891 = vpow2.f32 %v1062_v51  ;;  %v1076_v56 = vmul.f32 1.442695, %v1032_v41 }
 0x35b   :  { %2893 = vpow2.f32 %v1064_v54 }
 0x35c   :  { %2895 = vpow2.f32 %v1066_v60 }
 0x35d   :  { %2897 = vpow2.f32 %v1068_v36 }
 0x35e   :  { %2899 = vpow2.f32 %v1070_v32 }
 0x35f   :  { %2901 = vpow2.f32 %v1072_v38 }
 0x360   :  { %2903 = vpow2.f32 %v1074_v63 }
 0x361   :  { %2905 = vpow2.f32 %v1076_v56 }
 0x363   :  { %v2890_v19 = vpop.eup %2889 }
 0x364   :  { %v2892_v59 = vpop.eup %2891  ;;  %v1132_v26 = vadd.f32 1.0, %v2890_v19 }
 0x365   :  { %v2894_v47 = vpop.eup %2893  ;;  %v1133_v53 = vadd.f32 1.0, %v2892_v59 }
 0x366   :  { %v2896_v48 = vpop.eup %2895  ;;  %v1134_v13 = vadd.f32 1.0, %v2894_v47  ;;  %2907 = vrcp.f32 %v1132_v26 }
 0x367   :  { %v2898_v58 = vpop.eup %2897  ;;  %v1135_v27 = vadd.f32 1.0, %v2896_v48  ;;  %2909 = vrcp.f32 %v1133_v53 }
 0x368   :  { %v2900_v9 = vpop.eup %2899  ;;  %v1136_v51 = vadd.f32 1.0, %v2898_v58  ;;  %2911 = vrcp.f32 %v1134_v13 }
 0x369   :  { %v2902_v10 = vpop.eup %2901  ;;  %v1137_v54 = vadd.f32 1.0, %v2900_v9  ;;  %2913 = vrcp.f32 %v1135_v27 }
 0x36a   :  { %v2904_v60 = vpop.eup %2903  ;;  %v1138_v63 = vadd.f32 1.0, %v2902_v10  ;;  %2915 = vrcp.f32 %v1136_v51 }
 0x36b   :  { %v2906_v56 = vpop.eup %2905  ;;  %v1139_v41 = vadd.f32 1.0, %v2904_v60  ;;  %2917 = vrcp.f32 %v1137_v54 }
 0x36c   :  { %v1140_v36 = vadd.f32 1.0, %v2906_v56  ;;  %2919 = vrcp.f32 %v1138_v63 }
 0x36d   :  { %2921 = vrcp.f32 %v1139_v41 }
 0x36e   :  { %2923 = vrcp.f32 %v1140_v36 }
 0x370   :  { %v2908_v32 = vpop.eup %2907 }
 0x371   :  { %v2910_v38 = vpop.eup %2909  ;;  %v1204_v48 = vmul.f32 %v2908_v32, %v4191_v11 }
 0x372   :  { %v2912_v53 = vpop.eup %2911  ;;  %v1205_v19 = vmul.f32 %v2910_v38, %v4194_v20 }
 0x373   :  { %v2914_v59 = vpop.eup %2913  ;;  %v1206_v26 = vmul.f32 %v2912_v53, %v4197_v35  ;;  %1240 = vst [vmem:[%s5108_s4] sm:$0xff] %v1204_v48 }
 0x374   :  { %v2916_v47 = vpop.eup %2915  ;;  %v1207_v13 = vmul.f32 %v2914_v59, %v4200_v34  ;;  %1241 = vst [vmem:[%s5108_s4 + $0x8] sm:$0xff] %v1205_v19 }
 0x375   :  { %v2918_v58 = vpop.eup %2917  ;;  %v1208_v11 = vmul.f32 %v2916_v47, %v4203_v3  ;;  %1242 = vst [vmem:[%s5108_s4 + $0x10] sm:$0xff] %v1206_v26 }
 0x376   :  { %v2920_v20 = vpop.eup %2919  ;;  %v1209_v35 = vmul.f32 %v2918_v58, %v4206_v17  ;;  %1243 = vst [vmem:[%s5108_s4 + $0x18] sm:$0xff] %v1207_v13 }
 0x377   :  { %v2922_v27 = vpop.eup %2921  ;;  %v1210_v34 = vmul.f32 %v2920_v20, %v4209_v42  ;;  %1244 = vst [vmem:[%s5108_s4 + $0x20] sm:$0xff] %v1208_v11 }
 0x378   :  { %v2924_v9 = vpop.eup %2923  ;;  %v1211_v3 = vmul.f32 %v2922_v27, %v4212_v1  ;;  %1245 = vst [vmem:[%s5108_s4 + $0x28] sm:$0xff] %v1209_v35 }
 0x379   :  { %v1212_v17 = vmul.f32 %v2924_v9, %v4215_v50  ;;  %1246 = vst [vmem:[%s5108_s4 + $0x30] sm:$0xff] %v1210_v34 }
 0x37a   :  { %1247 = vst [vmem:[%s5108_s4 + $0x38] sm:$0xff] %v1211_v3 }
 0x37b   :  { %1248 = vst [vmem:[%s5108_s4 + $0x40] sm:$0xff] %v1212_v17 }
 0x411   :  { %v2739_v42 = vpop.f32.mrb[40].mxu0 }
 0x412   :  { %v1965_v1 = vmul.f32 0.00022956841, %v2739_v42  ;;  %v1945_v51 = vpop.f32.mrb[41].mxu0 }
 0x413   :  { %v1964_v10 = vmul.f32 0.00022956841, %v1945_v51 }
 0x414   :  { %v2058_v54 = vmul.f32 %v1965_v1, %v1965_v1  ;;  %2080 = vperm.xlu1 %2875, %v1965_v1  }
 0x415   :  { %v2057_v60 = vmul.f32 %v1964_v10, %v1964_v10  ;;  %v2753_v50 = vpop.f32.mrb[40].mxu1  ;;  %v2742_v63 = vpop.f32.mrb[42].mxu0 }
 0x416   :  { %v2054_v56 = vmul.f32 0.00022956841, %v2753_v50  ;;  %v2034_v41 = vpop.f32.mrb[41].mxu1  ;;  %v1967_v36 = vmul.f32 0.00022956841, %v2742_v63  ;;  %v1955_v32 = vpop.f32.mrb[43].mxu0 }
 0x417   :  { %v2053_v38 = vmul.f32 0.00022956841, %v2034_v41  ;;  %v1966_v48 = vmul.f32 0.00022956841, %v1955_v32  ;;  %v5262_v50 = vmov 1   ;;  %v5265_v32 = vld [vmem:[#allocation28_spill] sm:$0xff] }
 0x418   :  { %v2062_v53 = vsub.f32 %v2054_v56, %v2058_v54  ;;  %v2060_v19 = vmul.f32 %v1967_v36, %v1967_v36  ;;  %2075 = vperm.xlu1 %2875, %v1964_v10   ;;  %v5263_v56 = vld [vmem:[#allocation22_spill] sm:$0xff]  ;;  %v5286_v41 = vld [vmem:[#allocation21_spill] sm:$0xff] }
 0x419   :  { %v2061_v59 = vsub.f32 %v2053_v38, %v2057_v60  ;;  %v2756_v26 = vpop.f32.mrb[42].mxu1  ;;  %v2059_v47 = vmul.f32 %v1966_v48, %v1966_v48 }
 0x41a   :  { %v2066_v13 = vadd.f32 1e-05, %v2062_v53  ;;  %v2056_v58 = vmul.f32 0.00022956841, %v2756_v26  ;;  %v2044_v11 = vpop.f32.mrb[43].mxu1  ;;  %v5291_v26 = vld [vmem:[#allocation40_spill] sm:$0xff] }
 0x41b   :  { %v2065_v20 = vadd.f32 1e-05, %v2061_v59  ;;  %v2055_v35 = vmul.f32 0.00022956841, %v2044_v11  ;;  %v5292_v53 = vld [vmem:[#allocation42_spill] sm:$0xff] }
 0x41c   :  { %2925 = vrsqrt.f32 %v2066_v13  ;;  %v2064_v27 = vsub.f32 %v2056_v58, %v2060_v19  ;;  %2090 = vperm.xlu1 %2875, %v1967_v36  }
 0x41d   :  { %2927 = vrsqrt.f32 %v2065_v20  ;;  %v2063_v34 = vsub.f32 %v2055_v35, %v2059_v47  ;;  %v5270_v20 = vld [vmem:[#allocation30_spill] sm:$0xff] }
 0x41e   :  { %v2068_v9 = vadd.f32 1e-05, %v2064_v27  ;;  %v5271_v27 = vld [vmem:[#allocation31_spill] sm:$0xff] }
 0x41f   :  { %v2067_v3 = vadd.f32 1e-05, %v2063_v34 }
 0x420   :  { %2929 = vrsqrt.f32 %v2068_v9  ;;  %2085 = vperm.xlu1 %2875, %v1966_v48   ;;  %v5272_v9 = vld [vmem:[#allocation36_spill] sm:$0xff] }
 0x421   :  { %2931 = vrsqrt.f32 %v2067_v3 }
 0x426   :  { %v2926_v17 = vpop.eup %2925 }
 0x427   :  { %v2928_v42 = vpop.eup %2927  ;;  %v2130_v1 = vmul.f32 %v2926_v17, %v4074_v39  ;;  %v5273_v17 = vld [vmem:[#allocation38_spill] sm:$0xff] }
 0x428   :  { %v2129_v51 = vmul.f32 %v2928_v42, %v4080_v45  ;;  %v5289_v42 = vld [vmem:[#allocation33_spill] sm:$0xff] }
 0x429   :  { %2140 = vperm.xlu0 %2872, %v2130_v1   ;;  %v5274_v1 = vld [vmem:[#allocation45_spill] sm:$0xff] }
 0x42a   :  { %v2930_v10 = vpop.eup %2929  ;;  %2135 = vperm.xlu1 %2875, %v2129_v51  }
 0x42b   :  { %v2132_v54 = vmul.f32 %v2930_v10, %v4087_v49  ;;  %v2932_v60 = vpop.eup %2931  ;;  %v5275_v10 = vld [vmem:[#allocation47_spill] sm:$0xff] }
 0x42c   :  { %v2131_v63 = vmul.f32 %v2932_v60, %v4093_v46 }
 0x42d   :  { %2150 = vperm.xlu0 %2872, %v2132_v54  }
 0x42e   :  { %2877 = vset.pattern.permute.xlu1 %v5262_v50 }
 0x42f   :  { %980 = vperm.xlu1 %2877, %v4093_v46   ;;  %v5264_v46 = vld [vmem:[#allocation23_spill] sm:$0xff] }
 0x431   :  { %2876 = vset.pattern.permute.xlu0 %v5262_v50 }
 0x432   :  { %975 = vperm.xlu0 %2876, %v4074_v39   ;;  %v5285_v39 = vld [vmem:[#allocation20_spill] sm:$0xff] }
 0x433   :  { %2878 = vset.pattern.permute.xlu1 %v5247_v12 }
 0x434   :  { %2145 = vperm.xlu1 %2878, %v2131_v63  }
 0x436   :  { %2880 = vset.pattern.permute.xlu0 %v5247_v12 }
 0x438   :  { %2879 = vset.pattern.permute.xlu1 %v5262_v50  ;;  %v5288_v50 = vld [vmem:[#allocation25_spill] sm:$0xff] }
 0x439   :  { %985 = vperm.xlu1 %2879, %v4087_v49   ;;  %v5290_v49 = vld [vmem:[#allocation35_spill] sm:$0xff] }
 0x493   :  { %v4274_v45 = vpop.permute.xlu1 %2080 }
 0x497   :  { %v2076_v58 = vpop.permute.xlu1 %2075 }
 0x498   :  { %v2093_v34 = vsub.f32 %v5285_v39, %v2076_v58  ;;  %v2094_v29 = vsub.f32 %v5286_v41, %v2076_v58  ;;  %v2095_v60 = vsub.f32 %v5287_v44, %v2076_v58  ;;  %v2096_v36 = vsub.f32 %v5288_v50, %v2076_v58 }
 0x499   :  { %v2097_v48 = vsub.f32 %v5289_v42, %v2076_v58  ;;  %v2098_v59 = vsub.f32 %v5290_v49, %v2076_v58  ;;  %v2099_v6 = vsub.f32 %v5291_v26, %v2076_v58  ;;  %v2100_v21 = vsub.f32 %v5292_v53, %v2076_v58 }
 0x49b   :  { %v4294_v11 = vpop.permute.xlu1 %2090 }
 0x49c   :  { %v2120_v35 = vsub.f32 %v5270_v20, %v4294_v11  ;;  %v4314_v20 = vpop.permute.xlu0 %919 }
 0x49f   :  { %v4316_v13 = vpop.permute.xlu1 %2085 }
 0x4a0   :  { %5276 = vst [vmem:[#allocation2_spill] sm:$0xff] %v4316_v13  ;;  %v4336_v3 = vpop.permute.xlu0 %929 }
 0x4a1   :  { %5284 = vst [vmem:[#allocation3_spill] sm:$0xff] %v4336_v3  ;;  %v2101_v3 = vsub.f32 %v4028_v5, %v2076_v58 }
 0x4a8   :  { %v4342_v54 = vpop.permute.xlu0 %2140 }
 0x4a9   :  { %v2136_v63 = vpop.permute.xlu1 %2135 }
 0x4aa   :  { %v2153_v39 = vmul.f32 %v2136_v63, %v2093_v34  ;;  %v2154_v13 = vmul.f32 %v2136_v63, %v2094_v29  ;;  %v2155_v41 = vmul.f32 %v2136_v63, %v2095_v60  ;;  %v2156_v51 = vmul.f32 %v2136_v63, %v2096_v36 }
 0x4ab   :  { %v2157_v44 = vmul.f32 %v2136_v63, %v2097_v48  ;;  %v2158_v47 = vmul.f32 %v2136_v63, %v2098_v59  ;;  %v2159_v50 = vmul.f32 %v2136_v63, %v2099_v6  ;;  %v2160_v30 = vmul.f32 %v2136_v63, %v2100_v21 }
 0x4ac   :  { %v2161_v4 = vmul.f32 %v2136_v63, %v2101_v3  ;;  %v4350_v19 = vadd.f32 %v2153_v39, %v4188_v31  ;;  %v4353_v49 = vadd.f32 %v2154_v13, %v4188_v31  ;;  %v4356_v26 = vadd.f32 %v2155_v41, %v4188_v31  ;;  %v2151_v59 = vpop.permute.xlu0 %2150 }
 0x4ad   :  { %v4359_v5 = vadd.f32 %v2156_v51, %v4188_v31  ;;  %v4362_v29 = vadd.f32 %v2157_v44, %v4188_v31  ;;  %v4365_v36 = vadd.f32 %v2158_v47, %v4188_v31  ;;  %v4368_v6 = vadd.f32 %v2159_v50, %v4188_v31 }
 0x4ae   :  { %v4371_v21 = vadd.f32 %v2160_v30, %v4188_v31  ;;  %v4374_v48 = vadd.f32 %v2161_v4, %v4188_v31  ;;  %v2225_v53 = vsub.f32 0.0, %v4350_v19  ;;  %v2226_v13 = vsub.f32 0.0, %v4353_v49 }
 0x4af   :  { %5293 = vst [vmem:[#allocation4_spill] sm:$0xff] %v4365_v36  ;;  %5294 = vst [vmem:[#allocation5_spill] sm:$0xff] %v4368_v6  ;;  %v2227_v58 = vsub.f32 0.0, %v4356_v26  ;;  %v2228_v34 = vsub.f32 0.0, %v4359_v5  ;;  %v2229_v47 = vsub.f32 0.0, %v4362_v29  ;;  %v2230_v3 = vsub.f32 0.0, %v4365_v36  ;;  %v4392_v36 = vpop.permute.xlu1 %980 }
 0x4b0   :  { %v2231_v42 = vsub.f32 0.0, %v4368_v6  ;;  %v2232_v30 = vsub.f32 0.0, %v4371_v21  ;;  %v2261_v51 = vmul.f32 1.442695, %v2225_v53  ;;  %v2263_v4 = vmul.f32 1.442695, %v2226_v13 }
 0x4b1   :  { %v2265_v31 = vmul.f32 1.442695, %v2227_v58  ;;  %v4384_v60 = vmul.f32 %v2151_v59, %v2120_v35  ;;  %v2233_v63 = vsub.f32 0.0, %v4374_v48  ;;  %v2267_v39 = vmul.f32 1.442695, %v2228_v34 }
 0x4b2   :  { %v2269_v41 = vmul.f32 1.442695, %v2229_v47  ;;  %v5295_v44 = vsub.f32 %v5271_v27, %v4294_v11  ;;  %2933 = vpow2.f32 %v2261_v51  ;;  %v2271_v12 = vmul.f32 1.442695, %v2230_v3 }
 0x4b3   :  { %v2273_v38 = vmul.f32 1.442695, %v2231_v42  ;;  %v2275_v6 = vmul.f32 1.442695, %v2232_v30  ;;  %2935 = vpow2.f32 %v2263_v4  ;;  %v5296_v35 = vsub.f32 %v5272_v9, %v4294_v11 }
 0x4b4   :  { %v4390_v50 = vmul.f32 %v2151_v59, %v5295_v44  ;;  %v5297_v13 = vsub.f32 %v5273_v17, %v4294_v11  ;;  %v5298_v27 = vsub.f32 %v5274_v1, %v4294_v11  ;;  %2937 = vpow2.f32 %v2265_v31 }
 0x4b5   :  { %v4397_v53 = vmul.f32 %v2151_v59, %v5296_v35  ;;  %v5299_v47 = vsub.f32 %v5275_v10, %v4294_v11  ;;  %v5300_v9 = vsub.f32 %v4037_v8, %v4294_v11  ;;  %v5301_v17 = vsub.f32 %v4044_v7, %v4294_v11 }
 0x4b6   :  { %v4402_v58 = vmul.f32 %v2151_v59, %v5297_v13  ;;  %v4407_v34 = vmul.f32 %v2151_v59, %v5298_v27  ;;  %2939 = vpow2.f32 %v2267_v39  ;;  %v5302_v1 = vsub.f32 %v4042_v57, %v4294_v11 }
 0x4b7   :  { %v4412_v3 = vmul.f32 %v2151_v59, %v5299_v47  ;;  %v4417_v42 = vmul.f32 %v2151_v59, %v5300_v9  ;;  %v4422_v30 = vmul.f32 %v2151_v59, %v5301_v17  ;;  %v4431_v10 = vadd.f32 %v4392_v36, %v4170_v22 }
 0x4b8   :  { %v4427_v51 = vmul.f32 %v2151_v59, %v5302_v1  ;;  %v4435_v8 = vadd.f32 %v4392_v36, %v4172_v52  ;;  %2941 = vpow2.f32 %v2269_v41  ;;  %v2277_v4 = vmul.f32 1.442695, %v2233_v63 }
 0x4b9   :  { %2943 = vpow2.f32 %v2271_v12  ;;  %v1042_v7 = vsub.f32 0.0, %v4431_v10  ;;  %v5303_v57 = vsub.f32 %v3441_v15, %v4102_v62  ;;  %v5304_v11 = vsub.f32 %v3447_v18, %v4102_v62 }
 0x4ba   :  { %2945 = vpow2.f32 %v2273_v38  ;;  %v1043_v31 = vsub.f32 0.0, %v4435_v8  ;;  %v5305_v38 = vsub.f32 %v3454_v23, %v4102_v62  ;;  %v5307_v41 = vsub.f32 %v3518_v16, %v4102_v62 }
 0x4bb   :  { %2947 = vpow2.f32 %v2275_v6  ;;  %v941_v22 = vmul.f32 %v4314_v20, %v5303_v57  ;;  %v942_v52 = vmul.f32 %v4314_v20, %v5304_v11  ;;  %v1096_v59 = vmul.f32 1.442695, %v1042_v7 }
 0x4bc   :  { %2949 = vpow2.f32 %v2277_v4  ;;  %v1098_v63 = vmul.f32 1.442695, %v1043_v31  ;;  %v2934_v12 = vpop.eup %2933  ;;  %v943_v39 = vmul.f32 %v4314_v20, %v5305_v38  ;;  %v5306_v6 = vsub.f32 %v3458_v25, %v4102_v62 }
 0x4bd   :  { %v4459_v18 = vmul.f32 %v4314_v20, %v5307_v41  ;;  %v4463_v44 = vadd.f32 %v4392_v36, %v4174_v55  ;;  %v2936_v35 = vpop.eup %2935  ;;  %v5308_v23 = vsub.f32 %v3526_v24, %v4102_v62  ;;  %v2333_v25 = vadd.f32 1.0, %v2934_v12 }
 0x4be   :  { %v944_v15 = vmul.f32 %v4314_v20, %v5306_v6  ;;  %v4473_v27 = vadd.f32 %v4392_v36, %v4176_v14  ;;  %2951 = vpow2.f32 %v1096_v59  ;;  %v2938_v16 = vpop.eup %2937  ;;  %v5309_v47 = vsub.f32 %v3532_v28, %v4102_v62  ;;  %v4510_v6 = vpop.permute.xlu0 %975 }
 0x4bf   :  { %v4469_v13 = vmul.f32 %v4314_v20, %v5308_v23  ;;  %v2334_v9 = vadd.f32 1.0, %v2936_v35  ;;  %v4483_v24 = vadd.f32 %v4392_v36, %v4178_v0  ;;  %2953 = vpow2.f32 %v1098_v63 }
 0x4c0   :  { %v4479_v55 = vmul.f32 %v4314_v20, %v5309_v47  ;;  %v2940_v17 = vpop.eup %2939  ;;  %v2335_v1 = vadd.f32 1.0, %v2938_v16  ;;  %2955 = vrcp.f32 %v2333_v25  ;;  %v4487_v14 = vadd.f32 %v4392_v36, %v4180_v2 }
 0x4c1   :  { %v4491_v4 = vadd.f32 %v4392_v36, %v4182_v40  ;;  %v2336_v7 = vadd.f32 1.0, %v2940_v17  ;;  %2957 = vrcp.f32 %v2334_v9  ;;  %v4495_v31 = vadd.f32 %v4392_v36, %v4184_v61 }
 0x4c2   :  { %v2942_v28 = vpop.eup %2941  ;;  %v1044_v0 = vsub.f32 0.0, %v4463_v44  ;;  %v5310_v11 = vsub.f32 %v3535_v33, %v4102_v62  ;;  %2959 = vrcp.f32 %v2335_v1  ;;  %v1045_v40 = vsub.f32 0.0, %v4473_v27 }
 0x4c3   :  { %v2944_v57 = vpop.eup %2943  ;;  %v2337_v59 = vadd.f32 1.0, %v2942_v28  ;;  %2961 = vrcp.f32 %v2336_v7  ;;  %v4507_v61 = vadd.f32 %v4392_v36, %v4186_v43  ;;  %v1046_v38 = vsub.f32 0.0, %v4483_v24 }
 0x4c4   :  { %v4502_v2 = vmul.f32 %v4314_v20, %v5310_v11  ;;  %v2946_v63 = vpop.eup %2945  ;;  %v2338_v12 = vadd.f32 1.0, %v2944_v57  ;;  %v1047_v35 = vsub.f32 0.0, %v4487_v14  ;;  %v1048_v23 = vsub.f32 0.0, %v4491_v4 }
 0x4c5   :  { %v2948_v41 = vpop.eup %2947  ;;  %v2339_v33 = vadd.f32 1.0, %v2946_v63  ;;  %2963 = vrcp.f32 %v2337_v59  ;;  %v1049_v47 = vsub.f32 0.0, %v4495_v31  ;;  %v1100_v9 = vmul.f32 1.442695, %v1044_v0 }
 0x4c6   :  { %v2950_v25 = vpop.eup %2949  ;;  %v2340_v16 = vadd.f32 1.0, %v2948_v41  ;;  %2965 = vrcp.f32 %v2338_v12  ;;  %v1102_v43 = vmul.f32 1.442695, %v1045_v40  ;;  %v4516_v1 = vadd.f32 %v4510_v6, %v941_v22 }
 0x4c7   :  { %v2341_v17 = vadd.f32 1.0, %v2950_v25  ;;  %2967 = vrcp.f32 %v2339_v33  ;;  %v1050_v28 = vsub.f32 0.0, %v4507_v61  ;;  %v1104_v7 = vmul.f32 1.442695, %v1046_v38 }
 0x4c8   :  { %2969 = vrcp.f32 %v2340_v16  ;;  %v4520_v57 = vadd.f32 %v4510_v6, %v942_v52  ;;  %v2952_v11 = vpop.eup %2951  ;;  %v5311_v59 = vsub.f32 %v3580_v37, %v4102_v62  ;;  %v1106_v0 = vmul.f32 1.442695, %v1047_v35 }
 0x4c9   :  { %2971 = vrcp.f32 %v2341_v17  ;;  %v4529_v40 = vadd.f32 %v4510_v6, %v943_v39  ;;  %v2954_v22 = vpop.eup %2953  ;;  %v5312_v12 = vsub.f32 %v5263_v56, %v4274_v45  ;;  %v1108_v52 = vmul.f32 1.442695, %v1048_v23 }
 0x4ca   :  { %v4526_v63 = vmul.f32 %v4314_v20, %v5311_v59  ;;  %2973 = vpow2.f32 %v1100_v9  ;;  %v4538_v41 = vadd.f32 %v4510_v6, %v944_v15  ;;  %v2956_v37 = vpop.eup %2955  ;;  %v5313_v62 = vsub.f32 %v5264_v46, %v4274_v45 }
 0x4cb   :  { %v4535_v38 = vmul.f32 %v4342_v54, %v5312_v12  ;;  %2975 = vpow2.f32 %v1102_v43  ;;  %v1110_v39 = vmul.f32 1.442695, %v1049_v47  ;;  %v1033_v33 = vsub.f32 0.0, %v4516_v1  ;;  %v2958_v56 = vpop.eup %2957  ;;  %v5315_v12 = vld [vmem:[#allocation4_spill] sm:$0xff] }
 0x4cc   :  { %v4544_v20 = vmul.f32 %v4342_v54, %v5313_v62  ;;  %v2405_v35 = vmul.f32 %v2956_v37, %v4350_v19  ;;  %2977 = vpow2.f32 %v1104_v7  ;;  %v1112_v25 = vmul.f32 1.442695, %v1050_v28  ;;  %v2960_v15 = vpop.eup %2959 }
 0x4cd   :  { %v1034_v23 = vsub.f32 0.0, %v4520_v57  ;;  %v2406_v16 = vmul.f32 %v2958_v56, %v4353_v49  ;;  %2979 = vpow2.f32 %v1106_v0  ;;  %v1150_v9 = vadd.f32 1.0, %v2952_v11  ;;  %v2962_v17 = vpop.eup %2961 }
 0x4ce   :  { %v1035_v46 = vsub.f32 0.0, %v4529_v40  ;;  %v2407_v43 = vmul.f32 %v2960_v15, %v4356_v26  ;;  %2583 = vst [vmem:[%s5108_s4 + $0x120] sm:$0xff] %v2405_v35  ;;  %2981 = vpow2.f32 %v1108_v52  ;;  %v1151_v19 = vadd.f32 1.0, %v2954_v22  ;;  %v5319_v15 = vld [vmem:[#allocation37_spill] sm:$0xff] }
 0x4cf   :  { %v1036_v47 = vsub.f32 0.0, %v4538_v41  ;;  %v2964_v28 = vpop.eup %2963  ;;  %v5314_v7 = vsub.f32 %v5265_v32, %v4274_v45  ;;  %v2408_v11 = vmul.f32 %v2962_v17, %v4359_v5  ;;  %2584 = vst [vmem:[%s5108_s4 + $0x128] sm:$0xff] %v2406_v16  ;;  %2983 = vpow2.f32 %v1110_v39  ;;  %v5316_v39 = vld [vmem:[#allocation5_spill] sm:$0xff]  ;;  %v5321_v17 = vld [vmem:[#allocation39_spill] sm:$0xff] }
 0x4d0   :  { %v1078_v26 = vmul.f32 1.442695, %v1033_v33  ;;  %v2966_v59 = vpop.eup %2965  ;;  %v2409_v0 = vmul.f32 %v2964_v28, %v4362_v29  ;;  %2585 = vst [vmem:[%s5108_s4 + $0x130] sm:$0xff] %v2407_v43  ;;  %2985 = vpow2.f32 %v1112_v25  ;;  %v4572_v32 = vadd.f32 %v4510_v6, %v4459_v18  ;;  %v5317_v25 = vld [vmem:[#allocation29_spill] sm:$0xff] }
 0x4d1   :  { %v4560_v49 = vmul.f32 %v4342_v54, %v5314_v7  ;;  %v1080_v22 = vmul.f32 1.442695, %v1034_v23  ;;  %v2968_v5 = vpop.eup %2967  ;;  %v2410_v52 = vmul.f32 %v2966_v59, %v5315_v12  ;;  %2586 = vst [vmem:[%s5108_s4 + $0x138] sm:$0xff] %v2408_v11  ;;  %2987 = vrcp.f32 %v1150_v9 }
 0x4d2   :  { %v4580_v29 = vadd.f32 %v4510_v6, %v4469_v13  ;;  %v1082_v37 = vmul.f32 1.442695, %v1035_v46  ;;  %v2970_v62 = vpop.eup %2969  ;;  %v2411_v33 = vmul.f32 %v2968_v5, %v5316_v39  ;;  %2587 = vst [vmem:[%s5108_s4 + $0x140] sm:$0xff] %v2409_v0  ;;  %2989 = vrcp.f32 %v1151_v19  ;;  %v5323_v5 = vld [vmem:[#allocation44_spill] sm:$0xff] }
 0x4d3   :  { %v4588_v18 = vadd.f32 %v4510_v6, %v4479_v55  ;;  %v1084_v56 = vmul.f32 1.442695, %v1036_v47  ;;  %v2972_v35 = vpop.eup %2971  ;;  %v5318_v23 = vsub.f32 %v5317_v25, %v4274_v45  ;;  %v5320_v16 = vsub.f32 %v5319_v15, %v4274_v45  ;;  %2588 = vst [vmem:[%s5108_s4 + $0x148] sm:$0xff] %v2410_v52  ;;  %v5325_v52 = vld [vmem:[#allocation46_spill] sm:$0xff] }
 0x4d4   :  { %v2412_v46 = vmul.f32 %v2970_v62, %v4371_v21  ;;  %2991 = vpow2.f32 %v1078_v26  ;;  %v2974_v55 = vpop.eup %2973  ;;  %v5322_v43 = vsub.f32 %v5321_v17, %v4274_v45  ;;  %v2413_v47 = vmul.f32 %v2972_v35, %v4374_v48  ;;  %2589 = vst [vmem:[%s5108_s4 + $0x150] sm:$0xff] %v2411_v33  ;;  %v5327_v35 = vld [vmem:[#allocation49_spill] sm:$0xff] }
 0x4d5   :  { %v2165_v13 = vmul.f32 %v4342_v54, %v5318_v23  ;;  %v4598_v9 = vmul.f32 %v4342_v54, %v5320_v16  ;;  %v4616_v21 = vadd.f32 %v4510_v6, %v4502_v2  ;;  %2993 = vpow2.f32 %v1080_v22  ;;  %v2976_v28 = vpop.eup %2975 }
 0x4d6   :  { %v4608_v19 = vmul.f32 %v4342_v54, %v5322_v43  ;;  %2590 = vst [vmem:[%s5108_s4 + $0x158] sm:$0xff] %v2412_v46  ;;  %v1152_v7 = vadd.f32 1.0, %v2974_v55  ;;  %v4623_v11 = vadd.f32 %v4510_v6, %v4526_v63  ;;  %v1037_v48 = vsub.f32 0.0, %v4572_v32  ;;  %v2978_v26 = vpop.eup %2977  ;;  %2591 = vst [vmem:[%s5108_s4 + $0x160] sm:$0xff] %v2413_v47 }
 0x4d7   :  { %2995 = vpow2.f32 %v1082_v37  ;;  %v1153_v2 = vadd.f32 1.0, %v2976_v28  ;;  %v1038_v59 = vsub.f32 0.0, %v4580_v29  ;;  %v1039_v0 = vsub.f32 0.0, %v4588_v18  ;;  %v2980_v22 = vpop.eup %2979 }
 0x4d8   :  { %2997 = vpow2.f32 %v1084_v56  ;;  %v5324_v12 = vsub.f32 %v5323_v5, %v4274_v45  ;;  %v5326_v37 = vsub.f32 %v5325_v52, %v4274_v45  ;;  %v1154_v39 = vadd.f32 1.0, %v2978_v26  ;;  %v2982_v33 = vpop.eup %2981  ;;  %v4651_v26 = vpop.permute.xlu1 %2145 }
 0x4d9   :  { %2999 = vrcp.f32 %v1152_v7  ;;  %v5328_v25 = vsub.f32 %v5327_v35, %v4274_v45  ;;  %v1155_v23 = vadd.f32 1.0, %v2980_v22  ;;  %v1040_v15 = vsub.f32 0.0, %v4616_v21  ;;  %v2984_v16 = vpop.eup %2983 }
 0x4da   :  { %v4635_v63 = vmul.f32 %v4342_v54, %v5324_v12  ;;  %v4641_v62 = vmul.f32 %v4342_v54, %v5326_v37  ;;  %3001 = vrcp.f32 %v1153_v2  ;;  %v1156_v46 = vadd.f32 1.0, %v2982_v33  ;;  %v2986_v43 = vpop.eup %2985  ;;  %v5329_v37 = vld [vmem:[#allocation48_spill] sm:$0xff] }
 0x4db   :  { %v4647_v56 = vmul.f32 %v4342_v54, %v5328_v25  ;;  %3003 = vrcp.f32 %v1154_v39  ;;  %v1041_v55 = vsub.f32 0.0, %v4623_v11  ;;  %v1086_v17 = vmul.f32 1.442695, %v1037_v48  ;;  %v2988_v45 = vpop.eup %2987  ;;  %v5330_v39 = vld [vmem:[#allocation2_spill] sm:$0xff] }
 0x4dc   :  { %v1157_v47 = vadd.f32 1.0, %v2984_v16  ;;  %3005 = vrcp.f32 %v1155_v23  ;;  %v1088_v28 = vmul.f32 1.442695, %v1038_v59  ;;  %v1090_v7 = vmul.f32 1.442695, %v1039_v0  ;;  %v2990_v5 = vpop.eup %2989  ;;  %v5334_v23 = vld [vmem:[#allocation51_spill] sm:$0xff] }
 0x4dd   :  { %v1158_v54 = vadd.f32 1.0, %v2986_v43  ;;  %3007 = vrcp.f32 %v1156_v46  ;;  %v4655_v2 = vadd.f32 %v4535_v38, %v4510_v6  ;;  %v4659_v22 = vadd.f32 %v4544_v20, %v4510_v6 }
 0x4de   :  { %3009 = vrcp.f32 %v1157_v47  ;;  %v1222_v48 = vmul.f32 %v2988_v45, %v4431_v10  ;;  %v4664_v59 = vadd.f32 %v4560_v49, %v4510_v6  ;;  %v4667_v0 = vadd.f32 %v2165_v13, %v4510_v6  ;;  %v2992_v12 = vpop.eup %2991  ;;  %v5332_v49 = vld [vmem:[#allocation50_spill] sm:$0xff] }
 0x4df   :  { %3011 = vrcp.f32 %v1158_v54  ;;  %v1223_v38 = vmul.f32 %v2990_v5, %v4435_v8  ;;  %v1092_v52 = vmul.f32 1.442695, %v1040_v15  ;;  %v5331_v20 = vsub.f32 %v5329_v37, %v5330_v39  ;;  %v2994_v35 = vpop.eup %2993 }
 0x4e0   :  { %1258 = vst [vmem:[%s5108_s4 + $0x90] sm:$0xff] %v1222_v48  ;;  %3013 = vpow2.f32 %v1086_v17  ;;  %v1094_v10 = vmul.f32 1.442695, %v1041_v55  ;;  %v5333_v13 = vsub.f32 %v5332_v49, %v5330_v39  ;;  %v5335_v8 = vsub.f32 %v5334_v23, %v5330_v39 }
 0x4e1   :  { %v2177_v33 = vmul.f32 %v4651_v26, %v5331_v20  ;;  %v2996_v16 = vpop.eup %2995  ;;  %1259 = vst [vmem:[%s5108_s4 + $0x98] sm:$0xff] %v1223_v38  ;;  %3015 = vpow2.f32 %v1088_v28  ;;  %v1141_v46 = vadd.f32 1.0, %v2992_v12  ;;  %v2234_v17 = vsub.f32 0.0, %v4655_v2 }
 0x4e2   :  { %v2178_v25 = vmul.f32 %v4651_v26, %v5333_v13  ;;  %v2179_v15 = vmul.f32 %v4651_v26, %v5335_v8  ;;  %v2235_v55 = vsub.f32 0.0, %v4659_v22  ;;  %v2998_v43 = vpop.eup %2997  ;;  %3017 = vpow2.f32 %v1090_v7 }
 0x4e3   :  { %v1142_v47 = vadd.f32 1.0, %v2994_v35  ;;  %v2236_v45 = vsub.f32 0.0, %v4664_v59  ;;  %v2237_v54 = vsub.f32 0.0, %v4667_v0  ;;  %v3000_v5 = vpop.eup %2999  ;;  %3019 = vpow2.f32 %v1092_v52 }
 0x4e4   :  { %v1143_v48 = vadd.f32 1.0, %v2996_v16  ;;  %v1144_v37 = vadd.f32 1.0, %v2998_v43  ;;  %v4693_v20 = vadd.f32 %v2177_v33, %v4392_v36  ;;  %v3002_v28 = vpop.eup %3001  ;;  %v1224_v12 = vmul.f32 %v3000_v5, %v4463_v44  ;;  %v5336_v43 = vld [vmem:[#allocation26_spill] sm:$0xff] }
 0x4e5   :  { %3021 = vpow2.f32 %v1094_v10  ;;  %v4697_v38 = vadd.f32 %v2178_v25, %v4392_v36  ;;  %v4700_v7 = vadd.f32 %v2179_v15, %v4392_v36  ;;  %v3004_v35 = vpop.eup %3003  ;;  %v1225_v49 = vmul.f32 %v3002_v28, %v4473_v27 }
 0x4e6   :  { %3023 = vrcp.f32 %v1141_v46  ;;  %v4705_v52 = vadd.f32 %v4598_v9, %v4510_v6  ;;  %v2279_v33 = vmul.f32 1.442695, %v2234_v17  ;;  %v3006_v13 = vpop.eup %3005  ;;  %v1226_v23 = vmul.f32 %v3004_v35, %v4483_v24  ;;  %1260 = vst [vmem:[%s5108_s4 + $0xa0] sm:$0xff] %v1224_v12 }
 0x4e7   :  { %3025 = vrcp.f32 %v1142_v47  ;;  %v4713_v44 = vadd.f32 %v4608_v19, %v4510_v6  ;;  %v2281_v10 = vmul.f32 1.442695, %v2235_v55  ;;  %v3008_v27 = vpop.eup %3007  ;;  %v1227_v25 = vmul.f32 %v3006_v13, %v4487_v14  ;;  %1261 = vst [vmem:[%s5108_s4 + $0xa8] sm:$0xff] %v1225_v49 }
 0x4e8   :  { %3027 = vrcp.f32 %v1143_v48  ;;  %v4721_v24 = vadd.f32 %v4635_v63, %v4510_v6  ;;  %v2283_v9 = vmul.f32 1.442695, %v2236_v45  ;;  %v3010_v8 = vpop.eup %3009  ;;  %v1228_v15 = vmul.f32 %v3008_v27, %v4491_v4  ;;  %1262 = vst [vmem:[%s5108_s4 + $0xb0] sm:$0xff] %v1226_v23  ;;  %v5338_v48 = vld [vmem:[#allocation27_spill] sm:$0xff] }
 0x4e9   :  { %3029 = vrcp.f32 %v1144_v37  ;;  %v4729_v14 = vadd.f32 %v4641_v62, %v4510_v6  ;;  %v2285_v19 = vmul.f32 1.442695, %v2237_v54  ;;  %v3012_v16 = vpop.eup %3011  ;;  %v1229_v46 = vmul.f32 %v3010_v8, %v4495_v31  ;;  %1263 = vst [vmem:[%s5108_s4 + $0xb8] sm:$0xff] %v1227_v25 }
 0x4ea   :  { %v4737_v4 = vadd.f32 %v4647_v56, %v4510_v6  ;;  %3031 = vpow2.f32 %v2279_v33  ;;  %v3014_v63 = vpop.eup %3013  ;;  %v1230_v17 = vmul.f32 %v3012_v16, %v4507_v61  ;;  %1264 = vst [vmem:[%s5108_s4 + $0xc0] sm:$0xff] %v1228_v15  ;;  %v2238_v62 = vsub.f32 0.0, %v4705_v52  ;;  %v5340_v33 = vld [vmem:[#allocation32_spill] sm:$0xff] }
 0x4eb   :  { %v2239_v31 = vsub.f32 0.0, %v4713_v44  ;;  %3033 = vpow2.f32 %v2281_v10  ;;  %v3016_v55 = vpop.eup %3015  ;;  %1265 = vst [vmem:[%s5108_s4 + $0xc8] sm:$0xff] %v1229_v46  ;;  %v1145_v6 = vadd.f32 1.0, %v3014_v63  ;;  %v2240_v56 = vsub.f32 0.0, %v4721_v24 }
 0x4ec   :  { %3035 = vpow2.f32 %v2283_v9  ;;  %v5337_v61 = vsub.f32 %v5336_v43, %v5330_v39  ;;  %v3018_v45 = vpop.eup %3017  ;;  %1266 = vst [vmem:[%s5108_s4 + $0xd0] sm:$0xff] %v1230_v17  ;;  %v1146_v54 = vadd.f32 1.0, %v3016_v55  ;;  %v2241_v5 = vsub.f32 0.0, %v4729_v14  ;;  %v5342_v9 = vld [vmem:[#allocation34_spill] sm:$0xff] }
 0x4ed   :  { %3037 = vpow2.f32 %v2285_v19  ;;  %v5339_v37 = vsub.f32 %v5338_v48, %v5330_v39  ;;  %v3020_v12 = vpop.eup %3019  ;;  %v1147_v35 = vadd.f32 1.0, %v3018_v45  ;;  %v2242_v49 = vsub.f32 0.0, %v4737_v4 }
 0x4ee   :  { %v2171_v47 = vmul.f32 %v4651_v26, %v5337_v61  ;;  %3039 = vrcp.f32 %v1145_v6  ;;  %v5341_v13 = vsub.f32 %v5340_v33, %v5330_v39  ;;  %v1148_v27 = vadd.f32 1.0, %v3020_v12 }
 0x4ef   :  { %v2172_v28 = vmul.f32 %v4651_v26, %v5339_v37  ;;  %v3022_v10 = vpop.eup %3021  ;;  %3041 = vrcp.f32 %v1146_v54  ;;  %v2287_v25 = vmul.f32 1.442695, %v2238_v62  ;;  %v5343_v8 = vsub.f32 %v5342_v9, %v5330_v39 }
 0x4f0   :  { %v2173_v23 = vmul.f32 %v4651_v26, %v5341_v13  ;;  %v3024_v19 = vpop.eup %3023  ;;  %v1149_v16 = vadd.f32 1.0, %v3022_v10  ;;  %3043 = vrcp.f32 %v1147_v35  ;;  %v2289_v46 = vmul.f32 1.442695, %v2239_v31  ;;  %v5346_v13 = vld [vmem:[#allocation43_spill] sm:$0xff] }
 0x4f1   :  { %v2174_v15 = vmul.f32 %v4651_v26, %v5343_v8  ;;  %v4771_v63 = vadd.f32 %v2171_v47, %v4392_v36  ;;  %v3026_v17 = vpop.eup %3025  ;;  %3045 = vrcp.f32 %v1148_v27  ;;  %v1213_v55 = vmul.f32 %v3024_v19, %v4516_v1 }
 0x4f2   :  { %v2291_v6 = vmul.f32 1.442695, %v2240_v56  ;;  %v4775_v43 = vadd.f32 %v2172_v28, %v4392_v36  ;;  %v3028_v62 = vpop.eup %3027  ;;  %3047 = vrcp.f32 %v1149_v16  ;;  %v1214_v61 = vmul.f32 %v3026_v17, %v4520_v57  ;;  %v5344_v28 = vld [vmem:[#allocation41_spill] sm:$0xff] }
 0x4f3   :  { %v2293_v45 = vmul.f32 1.442695, %v2241_v5  ;;  %v4779_v54 = vadd.f32 %v2173_v23, %v4392_v36  ;;  %v3030_v31 = vpop.eup %3029  ;;  %v1215_v47 = vmul.f32 %v3028_v62, %v4529_v40  ;;  %1249 = vst [vmem:[%s5108_s4 + $0x48] sm:$0xff] %v1213_v55  ;;  %3049 = vpow2.f32 %v2287_v25 }
 0x4f4   :  { %v2295_v1 = vmul.f32 1.442695, %v2242_v49  ;;  %v4786_v56 = vadd.f32 %v2174_v15, %v4392_v36  ;;  %v3032_v48 = vpop.eup %3031  ;;  %v1216_v37 = vmul.f32 %v3030_v31, %v4538_v41  ;;  %1250 = vst [vmem:[%s5108_s4 + $0x50] sm:$0xff] %v1214_v61  ;;  %3051 = vpow2.f32 %v2289_v46 }
 0x4f5   :  { %v2243_v57 = vsub.f32 0.0, %v4771_v63  ;;  %v3034_v40 = vpop.eup %3033  ;;  %1251 = vst [vmem:[%s5108_s4 + $0x58] sm:$0xff] %v1215_v47  ;;  %3053 = vpow2.f32 %v2291_v6  ;;  %v2342_v5 = vadd.f32 1.0, %v3032_v48  ;;  %v5345_v12 = vsub.f32 %v5344_v28, %v5330_v39  ;;  %v5349_v48 = vld [vmem:[#allocation52_spill] sm:$0xff]  ;;  %v5352_v28 = vld [vmem:[#allocation7_spill] sm:$0xff] }
 0x4f6   :  { %v2244_v41 = vsub.f32 0.0, %v4775_v43  ;;  %v3036_v49 = vpop.eup %3035  ;;  %1252 = vst [vmem:[%s5108_s4 + $0x60] sm:$0xff] %v1216_v37  ;;  %3055 = vpow2.f32 %v2293_v45  ;;  %v2343_v33 = vadd.f32 1.0, %v3034_v40  ;;  %v5347_v23 = vsub.f32 %v5346_v13, %v5330_v39 }
 0x4f7   :  { %v2175_v35 = vmul.f32 %v4651_v26, %v5345_v12  ;;  %v2245_v27 = vsub.f32 0.0, %v4779_v54  ;;  %v3038_v25 = vpop.eup %3037  ;;  %3057 = vpow2.f32 %v2295_v1  ;;  %v2344_v9 = vadd.f32 1.0, %v3036_v49 }
 0x4f8   :  { %v2176_v10 = vmul.f32 %v4651_v26, %v5347_v23  ;;  %v2246_v8 = vsub.f32 0.0, %v4786_v56  ;;  %v3040_v15 = vpop.eup %3039  ;;  %v2345_v19 = vadd.f32 1.0, %v3038_v25  ;;  %3059 = vrcp.f32 %v2342_v5  ;;  %v4851_v25 = vpop.permute.xlu1 %985 }
 0x4f9   :  { %v2297_v16 = vmul.f32 1.442695, %v2243_v57  ;;  %v3042_v46 = vpop.eup %3041  ;;  %v1217_v17 = vmul.f32 %v3040_v15, %v4572_v32  ;;  %3061 = vrcp.f32 %v2343_v33  ;;  %v4812_v55 = vadd.f32 %v2175_v35, %v4392_v36  ;;  %v5351_v57 = vld [vmem:[#allocation3_spill] sm:$0xff]  ;;  %v5354_v33 = vld [vmem:[#allocation8_spill] sm:$0xff] }
 0x4fa   :  { %v2299_v39 = vmul.f32 1.442695, %v2244_v41  ;;  %v3044_v26 = vpop.eup %3043  ;;  %v1218_v6 = vmul.f32 %v3042_v46, %v4580_v29  ;;  %3063 = vrcp.f32 %v2344_v9  ;;  %v4816_v62 = vadd.f32 %v2176_v10, %v4392_v36  ;;  %v5348_v29 = vld [vmem:[#allocation6_spill] sm:$0xff] }
 0x4fb   :  { %v2301_v61 = vmul.f32 1.442695, %v2245_v27  ;;  %v3046_v45 = vpop.eup %3045  ;;  %v1219_v31 = vmul.f32 %v3044_v26, %v4588_v18  ;;  %1253 = vst [vmem:[%s5108_s4 + $0x68] sm:$0xff] %v1217_v17  ;;  %3065 = vrcp.f32 %v2345_v19  ;;  %v2303_v32 = vmul.f32 1.442695, %v2246_v8  ;;  %v5356_v8 = vld [vmem:[#allocation9_spill] sm:$0xff] }
 0x4fc   :  { %v3048_v47 = vpop.eup %3047  ;;  %v1220_v1 = vmul.f32 %v3046_v45, %v4616_v21  ;;  %1254 = vst [vmem:[%s5108_s4 + $0x70] sm:$0xff] %v1218_v6  ;;  %3067 = vpow2.f32 %v2297_v16  ;;  %v5350_v37 = vsub.f32 %v5348_v29, %v5349_v48  ;;  %v2247_v5 = vsub.f32 0.0, %v4812_v55 }
 0x4fd   :  { %v3050_v36 = vpop.eup %3049  ;;  %v1221_v40 = vmul.f32 %v3048_v47, %v4623_v11  ;;  %1255 = vst [vmem:[%s5108_s4 + $0x78] sm:$0xff] %v1219_v31  ;;  %3069 = vpow2.f32 %v2299_v39  ;;  %v5353_v12 = vsub.f32 %v5352_v28, %v5349_v48  ;;  %v2248_v11 = vsub.f32 0.0, %v4816_v62 }
 0x4fe   :  { %v959_v18 = vmul.f32 %v5351_v57, %v5350_v37  ;;  %v3052_v21 = vpop.eup %3051  ;;  %1256 = vst [vmem:[%s5108_s4 + $0x80] sm:$0xff] %v1220_v1  ;;  %v2346_v41 = vadd.f32 1.0, %v3050_v36  ;;  %3071 = vpow2.f32 %v2301_v61  ;;  %v5355_v13 = vsub.f32 %v5354_v33, %v5349_v48 }
 0x4ff   :  { %v960_v35 = vmul.f32 %v5351_v57, %v5353_v12  ;;  %v3054_v49 = vpop.eup %3053  ;;  %1257 = vst [vmem:[%s5108_s4 + $0x88] sm:$0xff] %v1221_v40  ;;  %v2347_v10 = vadd.f32 1.0, %v3052_v21  ;;  %v2249_v27 = vsub.f32 0.0, %v4693_v20  ;;  %3073 = vpow2.f32 %v2303_v32 }
 0x500   :  { %v961_v23 = vmul.f32 %v5351_v57, %v5355_v13  ;;  %v3056_v9 = vpop.eup %3055  ;;  %v5357_v15 = vsub.f32 %v5356_v8, %v5349_v48  ;;  %v2348_v16 = vadd.f32 1.0, %v3054_v49  ;;  %3075 = vrcp.f32 %v2346_v41  ;;  %v5358_v41 = vld [vmem:[#allocation14_spill] sm:$0xff]  ;;  %v5360_v13 = vld [vmem:[#allocation15_spill] sm:$0xff]  ;;  %v5362_v8 = vld [vmem:[#allocation16_spill] sm:$0xff] }
 0x501   :  { %v2250_v46 = vsub.f32 0.0, %v4697_v38  ;;  %v3058_v17 = vpop.eup %3057  ;;  %v2349_v39 = vadd.f32 1.0, %v3056_v9  ;;  %3077 = vrcp.f32 %v2347_v10  ;;  %v2251_v26 = vsub.f32 0.0, %v4700_v7 }
 0x502   :  { %v962_v19 = vmul.f32 %v5351_v57, %v5357_v15  ;;  %v2305_v6 = vmul.f32 1.442695, %v2247_v5  ;;  %v3060_v61 = vpop.eup %3059  ;;  %v2350_v45 = vadd.f32 1.0, %v3058_v17  ;;  %3079 = vrcp.f32 %v2348_v16 }
 0x503   :  { %v2307_v31 = vmul.f32 1.442695, %v2248_v11  ;;  %v4860_v32 = vadd.f32 %v4851_v25, %v959_v18  ;;  %v3062_v47 = vpop.eup %3061  ;;  %3081 = vrcp.f32 %v2349_v39  ;;  %v2414_v1 = vmul.f32 %v3060_v61, %v4655_v2  ;;  %v5364_v39 = vld [vmem:[#allocation17_spill] sm:$0xff] }
 0x504   :  { %v2309_v36 = vmul.f32 1.442695, %v2249_v27  ;;  %v4864_v29 = vadd.f32 %v4851_v25, %v960_v35  ;;  %v3064_v37 = vpop.eup %3063  ;;  %3083 = vrcp.f32 %v2350_v45  ;;  %v2415_v40 = vmul.f32 %v3062_v47, %v4659_v22  ;;  %v5366_v47 = vld [vmem:[#allocation19_spill] sm:$0xff] }
 0x505   :  { %v2311_v5 = vmul.f32 1.442695, %v2250_v46  ;;  %v4868_v21 = vadd.f32 %v4851_v25, %v961_v23  ;;  %v3066_v28 = vpop.eup %3065  ;;  %v2416_v18 = vmul.f32 %v3064_v37, %v4664_v59  ;;  %2592 = vst [vmem:[%s5108_s4 + $0x168] sm:$0xff] %v2414_v1  ;;  %3085 = vpow2.f32 %v2305_v6 }
 0x506   :  { %v2313_v2 = vmul.f32 1.442695, %v2251_v26  ;;  %v4875_v12 = vadd.f32 %v4851_v25, %v962_v19  ;;  %v3068_v35 = vpop.eup %3067  ;;  %v5359_v22 = vsub.f32 %v5358_v41, %v5349_v48  ;;  %v2417_v49 = vmul.f32 %v3066_v28, %v4667_v0  ;;  %2593 = vst [vmem:[%s5108_s4 + $0x170] sm:$0xff] %v2415_v40 }
 0x507   :  { %3087 = vpow2.f32 %v2307_v31  ;;  %v1051_v59 = vsub.f32 0.0, %v4860_v32  ;;  %v3070_v33 = vpop.eup %3069  ;;  %v5361_v23 = vsub.f32 %v5360_v13, %v5349_v48  ;;  %2594 = vst [vmem:[%s5108_s4 + $0x178] sm:$0xff] %v2416_v18  ;;  %v2351_v27 = vadd.f32 1.0, %v3068_v35 }
 0x508   :  { %v963_v11 = vmul.f32 %v5351_v57, %v5359_v22  ;;  %3089 = vpow2.f32 %v2309_v36  ;;  %v1052_v0 = vsub.f32 0.0, %v4864_v29  ;;  %v3072_v9 = vpop.eup %3071  ;;  %v5363_v15 = vsub.f32 %v5362_v8, %v5349_v48  ;;  %2595 = vst [vmem:[%s5108_s4 + $0x180] sm:$0xff] %v2417_v49 }
 0x509   :  { %v964_v10 = vmul.f32 %v5351_v57, %v5361_v23  ;;  %3091 = vpow2.f32 %v2311_v5  ;;  %v2352_v16 = vadd.f32 1.0, %v3070_v33  ;;  %v1053_v46 = vsub.f32 0.0, %v4868_v21  ;;  %v3074_v17 = vpop.eup %3073 }
 0x50a   :  { %v965_v19 = vmul.f32 %v5351_v57, %v5363_v15  ;;  %v5365_v26 = vsub.f32 %v5364_v39, %v5349_v48  ;;  %3093 = vpow2.f32 %v2313_v2  ;;  %v2353_v61 = vadd.f32 1.0, %v3072_v9  ;;  %v3076_v31 = vpop.eup %3075 }
 0x50b   :  { %v1054_v45 = vsub.f32 0.0, %v4875_v12  ;;  %v5367_v1 = vsub.f32 %v5366_v47, %v5349_v48  ;;  %v2354_v37 = vadd.f32 1.0, %v3074_v17  ;;  %3095 = vrcp.f32 %v2351_v27  ;;  %v3078_v5 = vpop.eup %3077 }
 0x50c   :  { %v966_v6 = vmul.f32 %v5351_v57, %v5365_v26  ;;  %v1114_v40 = vmul.f32 1.442695, %v1051_v59  ;;  %v2418_v28 = vmul.f32 %v3076_v31, %v4705_v52  ;;  %3097 = vrcp.f32 %v2352_v16  ;;  %v3080_v35 = vpop.eup %3079 }
 0x50d   :  { %v967_v36 = vmul.f32 %v5351_v57, %v5367_v1  ;;  %v4913_v18 = vadd.f32 %v4851_v25, %v963_v11  ;;  %v1116_v2 = vmul.f32 1.442695, %v1052_v0  ;;  %v2419_v41 = vmul.f32 %v3078_v5, %v4713_v44  ;;  %v3082_v57 = vpop.eup %3081 }
 0x50e   :  { %3099 = vrcp.f32 %v2353_v61  ;;  %v4917_v22 = vadd.f32 %v4851_v25, %v964_v10  ;;  %v1118_v48 = vmul.f32 1.442695, %v1053_v46  ;;  %v2420_v49 = vmul.f32 %v3080_v35, %v4721_v24  ;;  %2596 = vst [vmem:[%s5108_s4 + $0x188] sm:$0xff] %v2418_v28  ;;  %v3084_v59 = vpop.eup %3083 }
 0x50f   :  { %3101 = vrcp.f32 %v2354_v37  ;;  %v4924_v52 = vadd.f32 %v4851_v25, %v965_v19  ;;  %v1120_v11 = vmul.f32 1.442695, %v1054_v45  ;;  %v2421_v44 = vmul.f32 %v3082_v57, %v4729_v14  ;;  %2597 = vst [vmem:[%s5108_s4 + $0x190] sm:$0xff] %v2419_v41  ;;  %v3086_v24 = vpop.eup %3085 }
 0x510   :  { %v4931_v33 = vadd.f32 %v4851_v25, %v966_v6  ;;  %3103 = vpow2.f32 %v1114_v40  ;;  %v2422_v13 = vmul.f32 %v3084_v59, %v4737_v4  ;;  %2598 = vst [vmem:[%s5108_s4 + $0x198] sm:$0xff] %v2420_v49  ;;  %v4938_v23 = vadd.f32 %v4851_v25, %v967_v36 }
 0x511   :  { %v1055_v14 = vsub.f32 0.0, %v4913_v18  ;;  %3105 = vpow2.f32 %v1116_v2  ;;  %v3088_v10 = vpop.eup %3087  ;;  %2599 = vst [vmem:[%s5108_s4 + $0x1a0] sm:$0xff] %v2421_v44  ;;  %v2355_v27 = vadd.f32 1.0, %v3086_v24  ;;  %v1056_v0 = vsub.f32 0.0, %v4917_v22 }
 0x512   :  { %3107 = vpow2.f32 %v1118_v48  ;;  %v3090_v4 = vpop.eup %3089  ;;  %2600 = vst [vmem:[%s5108_s4 + $0x1a8] sm:$0xff] %v2422_v13  ;;  %v2356_v9 = vadd.f32 1.0, %v3088_v10  ;;  %v1057_v8 = vsub.f32 0.0, %v4924_v52  ;;  %v1058_v16 = vsub.f32 0.0, %v4931_v33 }
 0x513   :  { %3109 = vpow2.f32 %v1120_v11  ;;  %v3092_v15 = vpop.eup %3091  ;;  %v2357_v19 = vadd.f32 1.0, %v3090_v4  ;;  %v1059_v39 = vsub.f32 0.0, %v4938_v23  ;;  %v1122_v26 = vmul.f32 1.442695, %v1055_v14 }
 0x514   :  { %3111 = vrcp.f32 %v2355_v27  ;;  %v3094_v46 = vpop.eup %3093  ;;  %v2358_v17 = vadd.f32 1.0, %v3092_v15  ;;  %v1124_v45 = vmul.f32 1.442695, %v1056_v0  ;;  %v4953_v31 = vadd.f32 %v4384_v60, %v4851_v25 }
 0x515   :  { %3113 = vrcp.f32 %v2356_v9  ;;  %v3096_v6 = vpop.eup %3095  ;;  %v2359_v61 = vadd.f32 1.0, %v3094_v46  ;;  %v1126_v36 = vmul.f32 1.442695, %v1057_v8  ;;  %v4958_v37 = vadd.f32 %v4390_v50, %v4851_v25 }
 0x516   :  { %3115 = vrcp.f32 %v2357_v19  ;;  %v3098_v47 = vpop.eup %3097  ;;  %v2423_v1 = vmul.f32 %v3096_v6, %v4771_v63  ;;  %v1128_v28 = vmul.f32 1.442695, %v1058_v16  ;;  %v4963_v2 = vadd.f32 %v4397_v53, %v4851_v25 }
 0x517   :  { %3117 = vrcp.f32 %v2358_v17  ;;  %v2424_v5 = vmul.f32 %v3098_v47, %v4775_v43  ;;  %v1130_v63 = vmul.f32 1.442695, %v1059_v39  ;;  %v4971_v50 = vadd.f32 %v4402_v58, %v4851_v25 }
 0x518   :  { %v3100_v40 = vpop.eup %3099  ;;  %3119 = vrcp.f32 %v2359_v61  ;;  %2601 = vst [vmem:[%s5108_s4 + $0x1b0] sm:$0xff] %v2423_v1  ;;  %v2252_v53 = vsub.f32 0.0, %v4953_v31  ;;  %v2253_v58 = vsub.f32 0.0, %v4958_v37  ;;  %v2254_v49 = vsub.f32 0.0, %v4963_v2 }
 0x519   :  { %v3102_v60 = vpop.eup %3101  ;;  %v2425_v35 = vmul.f32 %v3100_v40, %v4779_v54  ;;  %3121 = vpow2.f32 %v1122_v26  ;;  %2602 = vst [vmem:[%s5108_s4 + $0x1b8] sm:$0xff] %v2424_v5  ;;  %v2255_v44 = vsub.f32 0.0, %v4971_v50  ;;  %v4990_v0 = vadd.f32 %v4407_v34, %v4851_v25 }
 0x51a   :  { %v3104_v41 = vpop.eup %3103  ;;  %v2426_v43 = vmul.f32 %v3102_v60, %v4786_v56  ;;  %3123 = vpow2.f32 %v1124_v45  ;;  %v2315_v14 = vmul.f32 1.442695, %v2252_v53  ;;  %v2317_v4 = vmul.f32 1.442695, %v2253_v58 }
 0x51b   :  { %v3106_v54 = vpop.eup %3105  ;;  %2603 = vst [vmem:[%s5108_s4 + $0x1c0] sm:$0xff] %v2425_v35  ;;  %3125 = vpow2.f32 %v1126_v36  ;;  %v1159_v48 = vadd.f32 1.0, %v3104_v41  ;;  %v4995_v15 = vadd.f32 %v4412_v3, %v4851_v25  ;;  %v2319_v19 = vmul.f32 1.442695, %v2254_v49 }
 0x51c   :  { %v3108_v57 = vpop.eup %3107  ;;  %2604 = vst [vmem:[%s5108_s4 + $0x1c8] sm:$0xff] %v2426_v43  ;;  %3127 = vpow2.f32 %v1128_v28  ;;  %v1160_v56 = vadd.f32 1.0, %v3106_v54  ;;  %v5003_v34 = vadd.f32 %v4417_v42, %v4851_v25  ;;  %v5011_v3 = vadd.f32 %v4422_v30, %v4851_v25 }
 0x51d   :  { %v3110_v11 = vpop.eup %3109  ;;  %3129 = vpow2.f32 %v1130_v63  ;;  %v1161_v59 = vadd.f32 1.0, %v3108_v57  ;;  %v5019_v42 = vadd.f32 %v4427_v51, %v4851_v25  ;;  %v2257_v6 = vsub.f32 0.0, %v4995_v15 }
 0x51e   :  { %v3112_v24 = vpop.eup %3111  ;;  %v1162_v13 = vadd.f32 1.0, %v3110_v11  ;;  %3131 = vrcp.f32 %v1159_v48  ;;  %v2258_v51 = vsub.f32 0.0, %v5003_v34  ;;  %v2259_v47 = vsub.f32 0.0, %v5011_v3 }
 0x51f   :  { %v3114_v10 = vpop.eup %3113  ;;  %v2427_v27 = vmul.f32 %v3112_v24, %v4812_v55  ;;  %3133 = vrcp.f32 %v1160_v56  ;;  %v2321_v55 = vmul.f32 1.442695, %v2255_v44  ;;  %v2260_v40 = vsub.f32 0.0, %v5019_v42 }
 0x520   :  { %v3116_v9 = vpop.eup %3115  ;;  %v2428_v8 = vmul.f32 %v3114_v10, %v4816_v62  ;;  %3135 = vrcp.f32 %v1161_v59  ;;  %v2325_v35 = vmul.f32 1.442695, %v2257_v6  ;;  %v2327_v43 = vmul.f32 1.442695, %v2258_v51 }
 0x521   :  { %v3118_v16 = vpop.eup %3117  ;;  %v2429_v46 = vmul.f32 %v3116_v9, %v4693_v20  ;;  %2605 = vst [vmem:[%s5108_s4 + $0x1d0] sm:$0xff] %v2427_v27  ;;  %3137 = vrcp.f32 %v1162_v13  ;;  %v2329_v48 = vmul.f32 1.442695, %v2259_v47  ;;  %v2331_v56 = vmul.f32 1.442695, %v2260_v40 }
 0x522   :  { %v3120_v62 = vpop.eup %3119  ;;  %v2430_v17 = vmul.f32 %v3118_v16, %v4697_v38  ;;  %2606 = vst [vmem:[%s5108_s4 + $0x1d8] sm:$0xff] %v2428_v8  ;;  %3139 = vpow2.f32 %v2315_v14  ;;  %v2256_v38 = vsub.f32 0.0, %v4990_v0 }
 0x523   :  { %v3122_v20 = vpop.eup %3121  ;;  %v2431_v39 = vmul.f32 %v3120_v62, %v4700_v7  ;;  %2607 = vst [vmem:[%s5108_s4 + $0x1e0] sm:$0xff] %v2429_v46  ;;  %3141 = vpow2.f32 %v2317_v4 }
 0x524   :  { %v3124_v26 = vpop.eup %3123  ;;  %2608 = vst [vmem:[%s5108_s4 + $0x1e8] sm:$0xff] %v2430_v17  ;;  %v1163_v30 = vadd.f32 1.0, %v3122_v20  ;;  %3143 = vpow2.f32 %v2319_v19  ;;  %v2323_v5 = vmul.f32 1.442695, %v2256_v38 }
 0x525   :  { %v3126_v7 = vpop.eup %3125  ;;  %2609 = vst [vmem:[%s5108_s4 + $0x1f0] sm:$0xff] %v2431_v39  ;;  %v1164_v61 = vadd.f32 1.0, %v3124_v26  ;;  %3145 = vpow2.f32 %v2321_v55 }
 0x526   :  { %v3128_v25 = vpop.eup %3127  ;;  %v1165_v45 = vadd.f32 1.0, %v3126_v7  ;;  %3147 = vrcp.f32 %v1163_v30 }
 0x527   :  { %v3130_v1 = vpop.eup %3129  ;;  %v1166_v36 = vadd.f32 1.0, %v3128_v25  ;;  %3149 = vrcp.f32 %v1164_v61 }
 0x528   :  { %v3132_v28 = vpop.eup %3131  ;;  %v1167_v60 = vadd.f32 1.0, %v3130_v1  ;;  %3151 = vrcp.f32 %v1165_v45 }
 0x529   :  { %v3134_v63 = vpop.eup %3133  ;;  %3153 = vrcp.f32 %v1166_v36  ;;  %v1231_v41 = vmul.f32 %v3132_v28, %v4860_v32 }
 0x52a   :  { %v3136_v53 = vpop.eup %3135  ;;  %3155 = vrcp.f32 %v1167_v60  ;;  %v1232_v54 = vmul.f32 %v3134_v63, %v4864_v29 }
 0x52b   :  { %v3138_v58 = vpop.eup %3137  ;;  %v1233_v57 = vmul.f32 %v3136_v53, %v4868_v21  ;;  %1267 = vst [vmem:[%s5108_s4 + $0xd8] sm:$0xff] %v1231_v41  ;;  %3157 = vpow2.f32 %v2323_v5 }
 0x52c   :  { %v3140_v49 = vpop.eup %3139  ;;  %v1234_v11 = vmul.f32 %v3138_v58, %v4875_v12  ;;  %1268 = vst [vmem:[%s5108_s4 + $0xe0] sm:$0xff] %v1232_v54  ;;  %3159 = vpow2.f32 %v2325_v35 }
 0x52d   :  { %v3142_v32 = vpop.eup %3141  ;;  %1269 = vst [vmem:[%s5108_s4 + $0xe8] sm:$0xff] %v1233_v57  ;;  %3161 = vpow2.f32 %v2327_v43  ;;  %v2360_v29 = vadd.f32 1.0, %v3140_v49 }
 0x52e   :  { %v3144_v21 = vpop.eup %3143  ;;  %1270 = vst [vmem:[%s5108_s4 + $0xf0] sm:$0xff] %v1234_v11  ;;  %3163 = vpow2.f32 %v2329_v48  ;;  %v2361_v59 = vadd.f32 1.0, %v3142_v32 }
 0x52f   :  { %v3146_v12 = vpop.eup %3145  ;;  %3165 = vpow2.f32 %v2331_v56  ;;  %v2362_v44 = vadd.f32 1.0, %v3144_v21 }
 0x530   :  { %v3148_v24 = vpop.eup %3147  ;;  %v2363_v13 = vadd.f32 1.0, %v3146_v12  ;;  %3167 = vrcp.f32 %v2360_v29 }
 0x531   :  { %v3150_v14 = vpop.eup %3149  ;;  %v1235_v10 = vmul.f32 %v3148_v24, %v4913_v18  ;;  %3169 = vrcp.f32 %v2361_v59 }
 0x532   :  { %v3152_v27 = vpop.eup %3151  ;;  %v1236_v4 = vmul.f32 %v3150_v14, %v4917_v22  ;;  %3171 = vrcp.f32 %v2362_v44 }
 0x533   :  { %v3154_v9 = vpop.eup %3153  ;;  %v1237_v8 = vmul.f32 %v3152_v27, %v4924_v52  ;;  %1271 = vst [vmem:[%s5108_s4 + $0xf8] sm:$0xff] %v1235_v10  ;;  %3173 = vrcp.f32 %v2363_v13 }
 0x534   :  { %v3156_v19 = vpop.eup %3155  ;;  %v1238_v16 = vmul.f32 %v3154_v9, %v4931_v33  ;;  %1272 = vst [vmem:[%s5108_s4 + $0x100] sm:$0xff] %v1236_v4 }
 0x535   :  { %v3158_v18 = vpop.eup %3157  ;;  %v1239_v46 = vmul.f32 %v3156_v19, %v4938_v23  ;;  %1273 = vst [vmem:[%s5108_s4 + $0x108] sm:$0xff] %v1237_v8 }
 0x536   :  { %v3160_v22 = vpop.eup %3159  ;;  %1274 = vst [vmem:[%s5108_s4 + $0x110] sm:$0xff] %v1238_v16  ;;  %v2364_v52 = vadd.f32 1.0, %v3158_v18 }
 0x537   :  { %v3162_v55 = vpop.eup %3161  ;;  %1275 = vst [vmem:[%s5108_s4 + $0x118] sm:$0xff] %v1239_v46  ;;  %v2365_v33 = vadd.f32 1.0, %v3160_v22 }
 0x538   :  { %v3164_v62 = vpop.eup %3163  ;;  %v2366_v17 = vadd.f32 1.0, %v3162_v55  ;;  %3175 = vrcp.f32 %v2364_v52 }
 0x539   :  { %v3166_v23 = vpop.eup %3165  ;;  %v2367_v20 = vadd.f32 1.0, %v3164_v62  ;;  %3177 = vrcp.f32 %v2365_v33 }
 0x53a   :  { %v3168_v39 = vpop.eup %3167  ;;  %v2368_v38 = vadd.f32 1.0, %v3166_v23  ;;  %3179 = vrcp.f32 %v2366_v17 }
 0x53b   :  { %v3170_v26 = vpop.eup %3169  ;;  %3181 = vrcp.f32 %v2367_v20  ;;  %v2432_v30 = vmul.f32 %v3168_v39, %v4953_v31 }
 0x53c   :  { %v3172_v6 = vpop.eup %3171  ;;  %3183 = vrcp.f32 %v2368_v38  ;;  %v2433_v7 = vmul.f32 %v3170_v26, %v4958_v37 }
 0x53d   :  { %v3174_v61 = vpop.eup %3173  ;;  %v2434_v51 = vmul.f32 %v3172_v6, %v4963_v2  ;;  %2610 = vst [vmem:[%s5108_s4 + $0x1f8] sm:$0xff] %v2432_v30 }
 0x53e   :  { %v2435_v25 = vmul.f32 %v3174_v61, %v4971_v50  ;;  %2611 = vst [vmem:[%s5108_s4 + $0x200] sm:$0xff] %v2433_v7 }
 0x53f   :  { %2612 = vst [vmem:[%s5108_s4 + $0x208] sm:$0xff] %v2434_v51 }
 0x540   :  { %2613 = vst [vmem:[%s5108_s4 + $0x210] sm:$0xff] %v2435_v25 }
 0x542   :  { %v3176_v31 = vpop.eup %3175 }
 0x543   :  { %v3178_v37 = vpop.eup %3177  ;;  %v2436_v2 = vmul.f32 %v3176_v31, %v4990_v0 }
 0x544   :  { %v3180_v45 = vpop.eup %3179  ;;  %v2437_v47 = vmul.f32 %v3178_v37, %v4995_v15 }
 0x545   :  { %v3182_v50 = vpop.eup %3181  ;;  %v2438_v1 = vmul.f32 %v3180_v45, %v5003_v34  ;;  %2614 = vst [vmem:[%s5108_s4 + $0x218] sm:$0xff] %v2436_v2 }
 0x546   :  { %v3184_v36 = vpop.eup %3183  ;;  %v2439_v40 = vmul.f32 %v3182_v50, %v5011_v3  ;;  %2615 = vst [vmem:[%s5108_s4 + $0x220] sm:$0xff] %v2437_v47 }
 0x547   :  { %v2440_v5 = vmul.f32 %v3184_v36, %v5019_v42  ;;  %2616 = vst [vmem:[%s5108_s4 + $0x228] sm:$0xff] %v2438_v1 }
 0x548   :  { %2617 = vst [vmem:[%s5108_s4 + $0x230] sm:$0xff] %v2439_v40 }
 0x549   :  { %2618 = vst [vmem:[%s5108_s4 + $0x238] sm:$0xff] %v2440_v5 }

</bundles_post_ra>
